<compile_context>
chip_gen: v6e
topology: v6e:2x2x1
jax: 0.10.0
libtpu: 0.0.40
codegen_flags: <defaults>
</compile_context>

<pallas_src>
import functools

import jax
import jax.numpy as jnp
from jax.experimental import pallas as pl
from jax.experimental.pallas import tpu as pltpu

NEG_BIAS = jnp.float32(-1e30)   # large finite "masked" value (no exp(-inf) NaNs)
LANE = 128


def _head_kernel(x_ref, wk_ref, wq_ref, wv_ref, bias_ref, o_ref, *, scale):
    # x_ref:   (NB, Tp, C)   NB batch elements' tokens (Tp = padded seq len)
    # w*_ref:  (C, HSp)      bf16 projection weights, stored (in, out), HS padded
    # bias_ref:(Tp, Tp)      additive causal mask: 0 (keep) / -1e30 (masked)
    # o_ref:   (NB, Tp, HSp)
    nb, tp, c = x_ref.shape
    hsp = wk_ref.shape[-1]

    # bf16 operands, f32 MXU accumulation (the fast path on v5e/v6e/v7x).
    xb = x_ref[...].reshape(nb * tp, c).astype(jnp.bfloat16)

    # QKV projections.  Softmax scale is folded into q here (T*HS multiplies
    # instead of a full VPU pass over the T*T score matrix).
    q = (jnp.dot(xb, wq_ref[...], preferred_element_type=jnp.float32)
         * scale).astype(jnp.bfloat16)
    k = jnp.dot(xb, wk_ref[...],
                preferred_element_type=jnp.float32).astype(jnp.bfloat16)
    v = jnp.dot(xb, wv_ref[...],
                preferred_element_type=jnp.float32).astype(jnp.bfloat16)

    q = q.reshape(nb, tp, hsp)
    k = k.reshape(nb, tp, hsp)
    v = v.reshape(nb, tp, hsp)

    # Scores + additive causal bias (single VPU add; mask built once in wrapper).
    wei = jnp.einsum("bqd,bkd->bqk", q, k,
                     preferred_element_type=jnp.float32)          # (NB, Tp, Tp) f32
    wei = wei + bias_ref[...]

    # Numerically-stable softmax, normalization deferred past the P@V matmul.
    m = jnp.max(wei, axis=-1, keepdims=True)
    p = jnp.exp(wei - m)                                           # un-normalized
    l = jnp.sum(p, axis=-1, keepdims=True)                         # (NB, Tp, 1)

    # Dropout (eval mode) == identity.

    out = jnp.einsum("bqk,bkd->bqd", p.astype(jnp.bfloat16), v,
                     preferred_element_type=jnp.float32)           # (NB, Tp, HSp)
    out = out * pl.reciprocal(l, approx=True)                      # EUP, ~free slot
    o_ref[...] = out.astype(o_ref.dtype)


def _round_up(x, m):
    return (x + m - 1) // m * m


def _pick_batch_block(B, max_nb=4):
    """Largest divisor of B that keeps the grid >= 2 steps (for v7x) and caps VMEM."""
    if B <= 2:
        return 1
    nb = 1
    for cand in range(1, min(max_nb, B // 2) + 1):
        if B % cand == 0:
            nb = cand
    return nb


@jax.jit
def head_forward(x, wk, wq, wv):
    """x: (B, T, C); wk/wq/wv: (C, head_size) -> (B, T, head_size)."""
    B, T, C = x.shape
    HS = wk.shape[-1]
    # NOTE: scale uses C (= n_embd)**-0.5, exactly as in the given PyTorch Head
    # (standard SDPA would use head_size**-0.5).
    scale = C ** (-0.5)

    T_pad = _round_up(T, LANE)    # lane-aligned (T,T) score tiles
    HS_pad = _round_up(HS, LANE)  # lane-dense output stores, fuller MXU N dim
    NB = _pick_batch_block(B)
    grid = (B // NB,)

    # Pad inputs / weights (zeros).  Padded key columns are killed by the causal
    # mask (col >= T > row for every real query row); padded V columns are zero
    # and sliced off; padded query rows are sliced off.
    x_p = x if T_pad == T else jnp.pad(x, ((0, 0), (0, T_pad - T), (0, 0)))
    pad_w = ((0, 0), (0, HS_pad - HS))
    wk_p = jnp.pad(wk, pad_w).astype(jnp.bfloat16)
    wq_p = jnp.pad(wq, pad_w).astype(jnp.bfloat16)
    wv_p = jnp.pad(wv, pad_w).astype(jnp.bfloat16)

    # Additive causal-mask bias, built once (constant block index -> DMA'd once).
    row = jax.lax.broadcasted_iota(jnp.int32, (T_pad, T_pad), 0)
    col = jax.lax.broadcasted_iota(jnp.int32, (T_pad, T_pad), 1)
    bias = jnp.where(col <= row, jnp.float32(0.0), NEG_BIAS)

    kernel = functools.partial(_head_kernel, scale=scale)

    flops = B * (3 * 2 * T_pad * C * HS_pad        # q,k,v projections
                 + 2 * T_pad * T_pad * HS_pad      # q @ k^T
                 + 2 * T_pad * T_pad * HS_pad)     # p @ v
    bytes_accessed = (x_p.size * x_p.dtype.itemsize
                      + 3 * C * HS_pad * 2
                      + T_pad * T_pad * 4
                      + B * T_pad * HS_pad * x.dtype.itemsize)

    out = pl.pallas_call(
        kernel,
        out_shape=jax.ShapeDtypeStruct((B, T_pad, HS_pad), x.dtype),
        grid_spec=pltpu.PrefetchScalarGridSpec(
            num_scalar_prefetch=0,
            grid=grid,
            in_specs=[
                pl.BlockSpec((NB, T_pad, C), lambda b: (b, 0, 0)),   # x (NB batches)
                pl.BlockSpec((C, HS_pad), lambda b: (0, 0)),         # Wk
                pl.BlockSpec((C, HS_pad), lambda b: (0, 0)),         # Wq
                pl.BlockSpec((C, HS_pad), lambda b: (0, 0)),         # Wv
                pl.BlockSpec((T_pad, T_pad), lambda b: (0, 0)),      # causal bias
            ],
            out_specs=pl.BlockSpec((NB, T_pad, HS_pad), lambda b: (b, 0, 0)),
        ),
        compiler_params=pltpu.CompilerParams(
            dimension_semantics=("parallel",)),
        cost_estimate=pl.CostEstimate(
            flops=flops,
            transcendentals=B * T_pad * T_pad,     # exp in softmax
            bytes_accessed=bytes_accessed),
    )(x_p, wk_p, wq_p, wv_p, bias)

    return out[:, :T, :HS]


def init_params(key, n_embd, head_size, dtype=jnp.float32):
    """nn.Linear(bias=False) default init U(-1/sqrt(fan_in), +), stored (in, out)."""
    kk, kq, kv = jax.random.split(key, 3)
    lim = 1.0 / (n_embd ** 0.5)
    wk = jax.random.uniform(kk, (n_embd, head_size), dtype, -lim, lim)
    wq = jax.random.uniform(kq, (n_embd, head_size), dtype, -lim, lim)
    wv = jax.random.uniform(kv, (n_embd, head_size), dtype, -lim, lim)
    return wk, wq, wv


if __name__ == "__main__":
    # Small shapes consistent with the module (n_embd = 384, T <= block_size = 265).
    B, T, n_embd, head_size = 2, 128, 384, 64
    key = jax.random.PRNGKey(0)
    kx, kp = jax.random.split(key)

    x = jax.random.normal(kx, (B, T, n_embd), jnp.float32)
    wk, wq, wv = init_params(kp, n_embd, head_size)

    out = head_forward(x, wk, wq, wv)
    out = jax.block_until_ready(out)

    # Plain-JAX f32 reference (eval-mode dropout == identity).
    q = x @ wq
    k = x @ wk
    v = x @ wv
    wei = (q @ jnp.swapaxes(k, -2, -1)) * (n_embd ** -0.5)
    tril = jnp.tril(jnp.ones((T, T), dtype=bool))
    wei = jnp.where(tril, wei, -jnp.inf)
    wei = jax.nn.softmax(wei, axis=-1)
    ref = wei @ v

    assert out.shape == (B, T, head_size)
    # bf16 matmul operands + approx reciprocal -> bf16-level tolerance.
    assert jnp.allclose(out, ref, atol=2e-2, rtol=2e-2), float(
        jnp.max(jnp.abs(out - ref)))

    print("KERNEL_OK")
</pallas_src>

<mosaic_0001>
module attributes {stable_mosaic.version = 11 : i64} {
  func.func @_head_kernel(%arg0: i32, %arg1: memref<1x128x384xf32, #tpu.memory_space<vmem>>, %arg2: memref<384x128xbf16, #tpu.memory_space<vmem>>, %arg3: memref<384x128xbf16, #tpu.memory_space<vmem>>, %arg4: memref<384x128xbf16, #tpu.memory_space<vmem>>, %arg5: memref<128x128xf32, #tpu.memory_space<vmem>>, %arg6: memref<1x128x128xf32, #tpu.memory_space<vmem>>) attributes {dimension_semantics = [#tpu.dimension_semantics<parallel>], iteration_bounds = array<i64: 2>, scalar_prefetch = 0 : i64, scratch_operands = 0 : i64, tpu.core_type = #tpu.core_type<tc>, window_params = [{transform_indices = @transform_0, window_bounds = array<i64: 1, 128, 384>}, {pipeline_mode = #tpu.pipeline_mode<synchronous>, transform_indices = @transform_1, window_bounds = array<i64: 384, 128>}, {pipeline_mode = #tpu.pipeline_mode<synchronous>, transform_indices = @transform_2, window_bounds = array<i64: 384, 128>}, {pipeline_mode = #tpu.pipeline_mode<synchronous>, transform_indices = @transform_3, window_bounds = array<i64: 384, 128>}, {pipeline_mode = #tpu.pipeline_mode<synchronous>, transform_indices = @transform_4, window_bounds = array<i64: 128, 128>}, {transform_indices = @transform_5, window_bounds = array<i64: 1, 128, 128>}]} {
    %c0 = arith.constant 0 : index
    %c0_0 = arith.constant 0 : index
    %c0_1 = arith.constant 0 : index
    %0 = vector.load %arg1[%c0, %c0_0, %c0_1] : memref<1x128x384xf32, #tpu.memory_space<vmem>>, vector<1x128x384xf32>
    %1 = vector.shape_cast %0 : vector<1x128x384xf32> to vector<128x384xf32>
    %2 = arith.truncf %1 : vector<128x384xf32> to vector<128x384xbf16>
    %c0_2 = arith.constant 0 : index
    %c0_3 = arith.constant 0 : index
    %3 = vector.load %arg3[%c0_2, %c0_3] : memref<384x128xbf16, #tpu.memory_space<vmem>>, vector<384x128xbf16>
    %cst = arith.constant dense<0.000000e+00> : vector<128x128xf32>
    %4 = tpu.matmul %2, %3, %cst {dimension_numbers = #tpu.dot_dimension_numbers<[1], [0], [0], [1], [0, 0, 1, 1], [], []>} : vector<128x384xbf16>, vector<384x128xbf16>, vector<128x128xf32> -> vector<128x128xf32>
    %cst_4 = arith.constant 0.0510310382 : f32
    %5 = vector.broadcast %cst_4 : f32 to vector<128x128xf32>
    %6 = arith.mulf %4, %5 : vector<128x128xf32>
    %7 = arith.truncf %6 : vector<128x128xf32> to vector<128x128xbf16>
    %c0_5 = arith.constant 0 : index
    %c0_6 = arith.constant 0 : index
    %8 = vector.load %arg2[%c0_5, %c0_6] : memref<384x128xbf16, #tpu.memory_space<vmem>>, vector<384x128xbf16>
    %cst_7 = arith.constant dense<0.000000e+00> : vector<128x128xf32>
    %9 = tpu.matmul %2, %8, %cst_7 {dimension_numbers = #tpu.dot_dimension_numbers<[1], [0], [0], [1], [0, 0, 1, 1], [], []>} : vector<128x384xbf16>, vector<384x128xbf16>, vector<128x128xf32> -> vector<128x128xf32>
    %10 = arith.truncf %9 : vector<128x128xf32> to vector<128x128xbf16>
    %c0_8 = arith.constant 0 : index
    %c0_9 = arith.constant 0 : index
    %11 = vector.load %arg4[%c0_8, %c0_9] : memref<384x128xbf16, #tpu.memory_space<vmem>>, vector<384x128xbf16>
    %cst_10 = arith.constant dense<0.000000e+00> : vector<128x128xf32>
    %12 = tpu.matmul %2, %11, %cst_10 {dimension_numbers = #tpu.dot_dimension_numbers<[1], [0], [0], [1], [0, 0, 1, 1], [], []>} : vector<128x384xbf16>, vector<384x128xbf16>, vector<128x128xf32> -> vector<128x128xf32>
    %13 = arith.truncf %12 : vector<128x128xf32> to vector<128x128xbf16>
    %14 = vector.shape_cast %7 : vector<128x128xbf16> to vector<1x128x128xbf16>
    %15 = vector.shape_cast %10 : vector<128x128xbf16> to vector<1x128x128xbf16>
    %16 = vector.shape_cast %13 : vector<128x128xbf16> to vector<1x128x128xbf16>
    "tpu.trace_start"() <{level = 10 : i32, message = "bqd,bkd->bqk"}> : () -> ()
    %cst_11 = arith.constant dense<0.000000e+00> : vector<1x128x128xf32>
    %17 = tpu.matmul %14, %15, %cst_11 {dimension_numbers = #tpu.dot_dimension_numbers<[2], [2], [1], [1], [0, 0, 0, 1, 1, 1], [0], [0]>} : vector<1x128x128xbf16>, vector<1x128x128xbf16>, vector<1x128x128xf32> -> vector<1x128x128xf32>
    "tpu.trace_stop"() : () -> ()
    %c0_12 = arith.constant 0 : index
    %c0_13 = arith.constant 0 : index
    %18 = vector.load %arg5[%c0_12, %c0_13] : memref<128x128xf32, #tpu.memory_space<vmem>>, vector<128x128xf32>
    %19 = vector.shape_cast %18 : vector<128x128xf32> to vector<1x128x128xf32>
    %20 = arith.addf %17, %19 : vector<1x128x128xf32>
    %cst_14 = arith.constant dense<0xFF800000> : vector<1x128xf32>
    %21 = vector.multi_reduction <maximumf>, %20, %cst_14 [2] : vector<1x128x128xf32> to vector<1x128xf32>
    %22 = vector.shape_cast %21 : vector<1x128xf32> to vector<1x128x1xf32>
    %23 = vector.broadcast %22 : vector<1x128x1xf32> to vector<1x128x128xf32>
    %24 = arith.subf %20, %23 : vector<1x128x128xf32>
    %25 = math.exp %24 : vector<1x128x128xf32>
    %cst_15 = arith.constant dense<0.000000e+00> : vector<1x128xf32>
    %26 = vector.multi_reduction <add>, %25, %cst_15 [2] : vector<1x128x128xf32> to vector<1x128xf32>
    %27 = vector.shape_cast %26 : vector<1x128xf32> to vector<1x128x1xf32>
    %28 = arith.truncf %25 : vector<1x128x128xf32> to vector<1x128x128xbf16>
    "tpu.trace_start"() <{level = 10 : i32, message = "bqk,bkd->bqd"}> : () -> ()
    %cst_16 = arith.constant dense<0.000000e+00> : vector<1x128x128xf32>
    %29 = tpu.matmul %28, %16, %cst_16 {dimension_numbers = #tpu.dot_dimension_numbers<[2], [1], [1], [2], [0, 0, 0, 1, 1, 2], [0], [0]>} : vector<1x128x128xbf16>, vector<1x128x128xbf16>, vector<1x128x128xf32> -> vector<1x128x128xf32>
    "tpu.trace_stop"() : () -> ()
    %30 = tpu.reciprocal %27 {approx = true} : vector<1x128x1xf32> -> vector<1x128x1xf32>
    %31 = vector.broadcast %30 : vector<1x128x1xf32> to vector<1x128x128xf32>
    %32 = arith.mulf %29, %31 : vector<1x128x128xf32>
    %c0_17 = arith.constant 0 : index
    %c0_18 = arith.constant 0 : index
    %c0_19 = arith.constant 0 : index
    %33 = vector.load %arg6[%c0_17, %c0_18, %c0_19] : memref<1x128x128xf32, #tpu.memory_space<vmem>>, vector<1x128x128xf32>
    tpu.vector_store %arg6[%c0_17, %c0_18, %c0_19], %32 {strides = array<i32>} : memref<1x128x128xf32, #tpu.memory_space<vmem>>, vector<1x128x128xf32>,
    return
  }
  func.func @transform_0(%arg0: i32) -> (i32, i32, i32) {
    %c0_i32 = arith.constant 0 : i32
    %c0_i32_0 = arith.constant 0 : i32
    %c0_i32_1 = arith.constant 0 : i32
    return %arg0, %c0_i32, %c0_i32_0 : i32, i32, i32
  }
  func.func @transform_1(%arg0: i32) -> (i32, i32) {
    %c0_i32 = arith.constant 0 : i32
    %c0_i32_0 = arith.constant 0 : i32
    %c0_i32_1 = arith.constant 0 : i32
    return %c0_i32, %c0_i32_0 : i32, i32
  }
  func.func @transform_2(%arg0: i32) -> (i32, i32) {
    %c0_i32 = arith.constant 0 : i32
    %c0_i32_0 = arith.constant 0 : i32
    %c0_i32_1 = arith.constant 0 : i32
    return %c0_i32, %c0_i32_0 : i32, i32
  }
  func.func @transform_3(%arg0: i32) -> (i32, i32) {
    %c0_i32 = arith.constant 0 : i32
    %c0_i32_0 = arith.constant 0 : i32
    %c0_i32_1 = arith.constant 0 : i32
    return %c0_i32, %c0_i32_0 : i32, i32
  }
  func.func @transform_4(%arg0: i32) -> (i32, i32) {
    %c0_i32 = arith.constant 0 : i32
    %c0_i32_0 = arith.constant 0 : i32
    %c0_i32_1 = arith.constant 0 : i32
    return %c0_i32, %c0_i32_0 : i32, i32
  }
  func.func @transform_5(%arg0: i32) -> (i32, i32, i32) {
    %c0_i32 = arith.constant 0 : i32
    %c0_i32_0 = arith.constant 0 : i32
    %c0_i32_1 = arith.constant 0 : i32
    return %arg0, %c0_i32, %c0_i32_0 : i32, i32, i32
  }
}

</mosaic_0001>

<bundles_post_ra>
// kernel: head_forward.1
= control target key start
LH: loop header
LB: loop body
LE: loop exit
PB: predicated region body
PF: predicated region fallthrough
CT: control target
= control target key end

     0   :  { %s2627_s18 = smov 0   ;;  %s3310_s0 = inlined_call_operand.vmem [shape: f32[2,128,384], index: 0, kind: input, shape index: {}]   ;;  %s3311_s1 = inlined_call_operand.vmem [shape: bf16[384,128], index: 1, kind: input, shape index: {}]   ;;  %s3312_s2 = inlined_call_operand.vmem [shape: bf16[384,128], index: 2, kind: input, shape index: {}]   ;;  %s3313_s3 = inlined_call_operand.vmem [shape: bf16[384,128], index: 3, kind: input, shape index: {}]   ;;  %s3314_s4 = inlined_call_operand.vmem [shape: f32[128,128], index: 4, kind: input, shape index: {}]   ;;  %s3315_s5 = inlined_call_operand.vmem [shape: f32[2,128,128], index: 5, kind: output, shape index: {}]  }
   0x1 LB: > { %s1929_s19 = sadd.s32 4294967295, %s2595_s18   ;;  %p1933_p0 = scmp.ge.s32.totalorder %s2595_s18, 1  ;;  %s2595_s18 = sphi %s2627_s18, %s15_s18  }
   0x2   : > { %p187_p1 = scmp.lt.s32.totalorder %s2595_s18, 3 }
   0x4   : > { %p188_p2 = pnand %p1933_p0, %p187_p1 }
   0x6   : > { %191 = sbr.rel (%p188_p2) target bundleno = 991 (0x3df), region = 40 }
   0xb   : > { %v2453_v0 = vld [vmem:[%s3312_s2 + $0x78] sm:$0xff]   ;;  %v2456_v3 = vld [vmem:[%s3312_s2 + $0x70] sm:$0xff]   ;;  %v2459_v6 = vld [vmem:[%s3312_s2 + $0x68] sm:$0xff]   ;;  %p215_p3 = scmp.lt.s32.totalorder %s1929_s19, 1 }
   0xc   : > { %v2454_v1 = vld [vmem:[%s3312_s2 + $0xb8] sm:$0xff]   ;;  %2012 = vmatprep.subr.bf16.mxu0 %v2453_v0  ;;  %v2457_v4 = vld [vmem:[%s3312_s2 + $0xb0] sm:$0xff]   ;;  %v2460_v7 = vld [vmem:[%s3312_s2 + $0xa8] sm:$0xff]  }
   0xd   : > { %v2455_v2 = vld [vmem:[%s3312_s2 + $0x38] sm:$0xff]   ;;  %2284 = vmatprep.subr.bf16.mxu1 %v2454_v1  ;;  %v2458_v5 = vld [vmem:[%s3312_s2 + $0x30] sm:$0xff]   ;;  %v2461_v8 = vld [vmem:[%s3312_s2 + $0x28] sm:$0xff]   ;;  %s3336_s19 = smov (!%p215_p3, %s1929_s19), 1 }
   0xe   : > { %2013 = vmatpush3.bf16.msra.mxu0 %v2455_v2  ;;  %2285 = vmatpush3.bf16.msra.mxu1 %v2454_v1  ;;  %v2462_v9 = vld [vmem:[%s3312_s2 + $0x60] sm:$0xff]   ;;  %v2465_v12 = vld [vmem:[%s3312_s2 + $0x58] sm:$0xff]   ;;  %v2468_v15 = vld [vmem:[%s3312_s2 + $0x50] sm:$0xff]   ;;  %s2444_s6 = smul.u32 384, %s3336_s19  ;;  %s2011_s16 = sshll.u32 %s3336_s19, 7 }
   0xf   : > { %2014 = vmatprep.subr.bf16.mxu0 %v2456_v3  ;;  %2286 = vmatprep.subr.bf16.mxu1 %v2457_v4  ;;  %v2463_v10 = vld [vmem:[%s3312_s2 + $0xa0] sm:$0xff]   ;;  %v2466_v13 = vld [vmem:[%s3312_s2 + $0x98] sm:$0xff]   ;;  %v2469_v16 = vld [vmem:[%s3312_s2 + $0x90] sm:$0xff]   ;;  %s3289_s21 = scalar_lea.vmem %s3315_s5, %s2011_s16 }
  0x10   : > { %v2464_v11 = vld [vmem:[%s3312_s2 + $0x20] sm:$0xff]   ;;  %v2467_v14 = vld [vmem:[%s3312_s2 + $0x18] sm:$0xff]   ;;  %v2470_v17 = vld [vmem:[%s3312_s2 + $0x10] sm:$0xff]   ;;  %s2705_s15 = scalar_lea.vmem %s3310_s0, %s2444_s6 }
  0x11   : > { %v2471_v18 = vld [vmem:[%s3312_s2 + $0x48] sm:$0xff]   ;;  %v230_v22 = vld [vmem:[%s2705_s15 + $0x20] sm:$0xff]  ;;  %v228_v23 = vld [vmem:[%s2705_s15 + $0x10] sm:$0xff] }
  0x12   : > { %2015 = vmatpush3.bf16.msra.mxu0 %v2458_v5  ;;  %2287 = vmatpush3.bf16.msra.mxu1 %v2457_v4  ;;  %v2472_v19 = vld [vmem:[%s3312_s2 + $0x88] sm:$0xff]   ;;  %v2474_v24 = vld [vmem:[%s3312_s2 + $0x40] sm:$0xff]   ;;  %v229_v31 = vld [vmem:[%s2705_s15 + $0x18] sm:$0xff] }
  0x13   : > { %2016 = vmatprep.subr.bf16.mxu0 %v2459_v6  ;;  %2288 = vmatprep.subr.bf16.mxu1 %v2460_v7  ;;  %v2473_v20 = vld [vmem:[%s3312_s2 + $0x8] sm:$0xff]   ;;  %v2475_v25 = vld [vmem:[%s3312_s2 + $0x80] sm:$0xff]   ;;  %v237_v33 = vld [vmem:[%s2705_s15 + $0x58] sm:$0xff] }
  0x14   : > { %v227_v21 = vld [vmem:[%s2705_s15 + $0x8] sm:$0xff]  ;;  %v2476_v28 = vld [vmem:[%s3312_s2] sm:$0xff]   ;;  %v2477_v34 = vld [vmem:[%s3311_s1 + $0x78] sm:$0xff]  }
  0x15   : > { %v2719_v26 = vpack.c.bf16 %v230_v22, %v227_v21  ;;  %v231_v27 = vld [vmem:[%s2705_s15 + $0x28] sm:$0xff]  ;;  %v226_v30 = vld [vmem:[%s2705_s15] sm:$0xff]  ;;  %v2480_v35 = vld [vmem:[%s3311_s1 + $0xb8] sm:$0xff]  }
  0x16   : > { %2017 = vmatpush3.bf16.msra.mxu0 %v2461_v8  ;;  %2289 = vmatpush3.bf16.msra.mxu1 %v2460_v7  ;;  %v2725_v29 = vpack.c.bf16 %v231_v27, %v228_v23  ;;  %v234_v32 = vld [vmem:[%s2705_s15 + $0x40] sm:$0xff]  ;;  %v2739_v36 = vpack.c.bf16 %v229_v31, %v226_v30  ;;  %v2478_v38 = vld [vmem:[%s3311_s1 + $0x38] sm:$0xff]   ;;  %v236_v40 = vld [vmem:[%s2705_s15 + $0x50] sm:$0xff] }
  0x17   : > { %2018 = vmatprep.subr.bf16.mxu0 %v2462_v9  ;;  %2290 = vmatprep.subr.bf16.mxu1 %v2463_v10  ;;  %v2741_v37 = vpack.c.bf16 %v237_v33, %v234_v32  ;;  %v233_v39 = vld [vmem:[%s2705_s15 + $0x38] sm:$0xff]  ;;  %v240_v41 = vld [vmem:[%s2705_s15 + $0x70] sm:$0xff]  ;;  %v243_v42 = vld [vmem:[%s2705_s15 + $0x88] sm:$0xff] }
  0x18   : > { %522 = vmatprep.mubr.bf16.mxu0 %v2719_v26  ;;  %2300 = vmatprep.mubr.bf16.mxu1 %v2725_v29  ;;  %v2479_v43 = vld [vmem:[%s3311_s1 + $0x70] sm:$0xff]   ;;  %v2753_v44 = vpack.c.bf16 %v236_v40, %v233_v39  ;;  %v2758_v46 = vpack.c.bf16 %v243_v42, %v240_v41  ;;  %v235_v48 = vld [vmem:[%s2705_s15 + $0x48] sm:$0xff]  ;;  %v246_v49 = vld [vmem:[%s2705_s15 + $0xa0] sm:$0xff] }
  0x19   : > { %v2481_v45 = vld [vmem:[%s3311_s1 + $0x30] sm:$0xff]   ;;  %v249_v50 = vld [vmem:[%s2705_s15 + $0xb8] sm:$0xff]  ;;  %v2482_v51 = vld [vmem:[%s3311_s1 + $0x68] sm:$0xff]  }
  0x1a   : > { %2019 = vmatpush3.bf16.msra.mxu0 %v2464_v11  ;;  %2291 = vmatpush3.bf16.msra.mxu1 %v2463_v10  ;;  %v232_v47 = vld [vmem:[%s2705_s15 + $0x30] sm:$0xff]  ;;  %v2776_v54 = vpack.c.bf16 %v249_v50, %v246_v49  ;;  %v239_v55 = vld [vmem:[%s2705_s15 + $0x68] sm:$0xff]  ;;  %v242_v56 = vld [vmem:[%s2705_s15 + $0x80] sm:$0xff] }
  0x1b   : > { %2020 = vmatprep.subr.bf16.mxu0 %v2465_v12  ;;  %2292 = vmatprep.subr.bf16.mxu1 %v2466_v13  ;;  %v2485_v52 = vld [vmem:[%s3311_s1 + $0xb0] sm:$0xff]   ;;  %v2774_v53 = vpack.c.bf16 %v235_v48, %v232_v47  ;;  %v2483_v57 = vld [vmem:[%s3311_s1 + $0x28] sm:$0xff]   ;;  %v2783_v58 = vpack.c.bf16 %v242_v56, %v239_v55  ;;  %v2484_v61 = vld [vmem:[%s3311_s1 + $0x60] sm:$0xff]  }
  0x1c   : > { %v252_v59 = vld [vmem:[%s2705_s15 + $0xd0] sm:$0xff]  ;;  %v255_v60 = vld [vmem:[%s2705_s15 + $0xe8] sm:$0xff]  ;;  %v2486_v63 = vld [vmem:[%s3311_s1 + $0x20] sm:$0xff]  }
  0x1d   : > { %v2790_v62 = vpack.c.bf16 %v255_v60, %v252_v59  ;;  %v238_v0 = vld [vmem:[%s2705_s15 + $0x60] sm:$0xff]  ;;  %v241_v1 = vld [vmem:[%s2705_s15 + $0x78] sm:$0xff]  ;;  %v2490_v5 = vld [vmem:[%s3311_s1 + $0xa8] sm:$0xff]  }
  0x1e   : > { %2021 = vmatpush3.bf16.msra.mxu0 %v2467_v14  ;;  %2293 = vmatpush3.bf16.msra.mxu1 %v2466_v13  ;;  %v258_v2 = vld [vmem:[%s2705_s15 + $0x100] sm:$0xff]  ;;  %v261_v3 = vld [vmem:[%s2705_s15 + $0x118] sm:$0xff]  ;;  %v2809_v6 = vpack.c.bf16 %v241_v1, %v238_v0  ;;  %v248_v9 = vld [vmem:[%s2705_s15 + $0xb0] sm:$0xff] }
  0x1f   : > { %2022 = vmatprep.subr.bf16.mxu0 %v2468_v15  ;;  %2294 = vmatprep.subr.bf16.mxu1 %v2469_v16  ;;  %v2487_v4 = vld [vmem:[%s3311_s1 + $0x58] sm:$0xff]   ;;  %v2811_v7 = vpack.c.bf16 %v261_v3, %v258_v2  ;;  %v264_v10 = vld [vmem:[%s2705_s15 + $0x130] sm:$0xff]  ;;  %v267_v13 = vld [vmem:[%s2705_s15 + $0x148] sm:$0xff] }
  0x20   : > { %v245_v8 = vld [vmem:[%s2705_s15 + $0x98] sm:$0xff]  ;;  %v2489_v14 = vld [vmem:[%s3311_s1 + $0x50] sm:$0xff]   ;;  %v2825_v15 = vpack.c.bf16 %v267_v13, %v264_v10  ;;  %v2492_v21 = vld [vmem:[%s3311_s1 + $0x48] sm:$0xff]  }
  0x21   : > { %v2488_v11 = vld [vmem:[%s3311_s1 + $0x18] sm:$0xff]   ;;  %v2819_v12 = vpack.c.bf16 %v248_v9, %v245_v8  ;;  %v2495_v22 = vld [vmem:[%s3311_s1 + $0xa0] sm:$0xff]   ;;  %v251_v23 = vld [vmem:[%s2705_s15 + $0xc8] sm:$0xff] }
  0x22   : > { %2023 = vmatpush3.bf16.msra.mxu0 %v2470_v17  ;;  %2295 = vmatpush3.bf16.msra.mxu1 %v2469_v16  ;;  %v2491_v16 = vld [vmem:[%s3311_s1 + $0x10] sm:$0xff]   ;;  %v2493_v27 = vld [vmem:[%s3311_s1 + $0x8] sm:$0xff]   ;;  %v2497_v31 = vld [vmem:[%s3311_s1 + $0x98] sm:$0xff]  }
  0x23   : > { %2024 = vmatprep.subr.bf16.mxu0 %v2471_v18  ;;  %2296 = vmatprep.subr.bf16.mxu1 %v2472_v19  ;;  %v244_v17 = vld [vmem:[%s2705_s15 + $0x90] sm:$0xff]  ;;  %v247_v18 = vld [vmem:[%s2705_s15 + $0xa8] sm:$0xff]  ;;  %v2494_v32 = vld [vmem:[%s3311_s1 + $0x40] sm:$0xff]  }
  0x24   : > { %v2496_v33 = vld [vmem:[%s3311_s1] sm:$0xff]   ;;  %v257_v39 = vld [vmem:[%s2705_s15 + $0xf8] sm:$0xff]  ;;  %v260_v40 = vld [vmem:[%s2705_s15 + $0x110] sm:$0xff] }
  0x25   : > { %v2877_v42 = vpack.c.bf16 %v260_v40, %v257_v39  ;;  %v259_v47 = vld [vmem:[%s2705_s15 + $0x108] sm:$0xff]  ;;  %v2500_v48 = vld [vmem:[%s3311_s1 + $0x80] sm:$0xff]   ;;  %v2501_v55 = vld [vmem:[%s3313_s3 + $0x78] sm:$0xff]  }
  0x26   : > { %2025 = vmatpush3.bf16.msra.mxu0 %v2473_v20  ;;  %2297 = vmatpush3.bf16.msra.mxu1 %v2472_v19  ;;  %v270_v19 = vld [vmem:[%s2705_s15 + $0x160] sm:$0xff]  ;;  %v273_v20 = vld [vmem:[%s2705_s15 + $0x178] sm:$0xff]  ;;  %v263_v49 = vld [vmem:[%s2705_s15 + $0x128] sm:$0xff] }
  0x27   : > { %2026 = vmatprep.subr.bf16.mxu0 %v2474_v24  ;;  %2298 = vmatprep.subr.bf16.mxu1 %v2475_v25  ;;  %v2845_v24 = vpack.c.bf16 %v247_v18, %v244_v17  ;;  %v266_v50 = vld [vmem:[%s2705_s15 + $0x140] sm:$0xff]  ;;  %v269_v59 = vld [vmem:[%s2705_s15 + $0x158] sm:$0xff]  ;;  %v272_v60 = vld [vmem:[%s2705_s15 + $0x170] sm:$0xff] }
  0x28   : > { %v262_v56 = vld [vmem:[%s2705_s15 + $0x120] sm:$0xff]  ;;  %v268_v0 = vld [vmem:[%s2705_s15 + $0x150] sm:$0xff]  ;;  %v271_v1 = vld [vmem:[%s2705_s15 + $0x168] sm:$0xff] }
  0x29   : > { %v2918_v2 = vpack.c.bf16 %v271_v1, %v268_v0  ;;  %v2502_v3 = vld [vmem:[%s3313_s3 + $0x38] sm:$0xff]   ;;  %v2505_v8 = vld [vmem:[%s3313_s3 + $0x68] sm:$0xff]   ;;  %v2507_v10 = vld [vmem:[%s3313_s3 + $0x60] sm:$0xff]  }
  0x2a   : > { %2027 = vmatpush3.bf16.msra.mxu0 %v2476_v28  ;;  %2299 = vmatpush3.bf16.msra.mxu1 %v2475_v25  ;;  %v2847_v25 = vpack.c.bf16 %v273_v20, %v270_v19  ;;  %v254_v28 = vld [vmem:[%s2705_s15 + $0xe0] sm:$0xff]  ;;  %v2506_v9 = vld [vmem:[%s3313_s3 + $0x28] sm:$0xff]   ;;  %v2509_v13 = vld [vmem:[%s3313_s3 + $0x58] sm:$0xff]  }
  0x2b   : > { %2092 = vmatprep.subr.bf16.mxu1 %v2477_v34  ;;  %2316 = vmatprep.subr.bf16.mxu0 %v2480_v35  ;;  %v2853_v30 = vpack.c.bf16 %v254_v28, %v251_v23  ;;  %v2498_v34 = vld [vmem:[%s3311_s1 + $0x90] sm:$0xff]   ;;  %v2513_v20 = vld [vmem:[%s3313_s3 + $0x48] sm:$0xff]   ;;  %v2515_v23 = vld [vmem:[%s3313_s3 + $0x40] sm:$0xff]  }
  0x2c   : > { %v2511_v17 = vld [vmem:[%s3313_s3 + $0x50] sm:$0xff]   ;;  %v2516_v28 = vld [vmem:[%s3313_s3] sm:$0xff]  }
  0x2d   : > { %523 = vmatmul.mubr.bf16.vlgmr.msra.gmra.mxu0 %v2739_v36  ;;  %2301 = vmatmul.mubr.bf16.vlgmr.msra.gmra.mxu1 %v2741_v37  ;;  %v2518_v18 = vld [vmem:[%s3313_s3 + $0xb0] sm:$0xff]  }
  0x2e   : > { %2093 = vmatpush3.bf16.msra.mxu1 %v2478_v38  ;;  %2317 = vmatpush3.bf16.msra.mxu0 %v2480_v35  ;;  %v250_v35 = vld [vmem:[%s2705_s15 + $0xc0] sm:$0xff]  ;;  %v253_v38 = vld [vmem:[%s2705_s15 + $0xd8] sm:$0xff]  ;;  %v2512_v19 = vld [vmem:[%s3313_s3 + $0x10] sm:$0xff]  }
  0x2f   : > { %2094 = vmatprep.subr.bf16.mxu1 %v2479_v43  ;;  %530 = vmatprep.mubr.bf16.mxu0 %v2753_v44  ;;  %v2875_v41 = vpack.c.bf16 %v253_v38, %v250_v35  ;;  %v2499_v43 = vld [vmem:[%s3311_s1 + $0x88] sm:$0xff]  }
  0x30   : > { %2304 = vmatprep.mubr.bf16.mxu1 %v2758_v46  ;;  %2318 = vmatprep.subr.bf16.mxu0 %v2485_v52 }
  0x32   : > { %2095 = vmatpush3.bf16.msra.mxu1 %v2481_v45  ;;  %2319 = vmatpush3.bf16.msra.mxu0 %v2485_v52  ;;  %v256_v45 = vld [vmem:[%s2705_s15 + $0xf0] sm:$0xff]  ;;  %v2895_v52 = vpack.c.bf16 %v266_v50, %v263_v49 }
  0x33   : > { %2096 = vmatprep.subr.bf16.mxu1 %v2482_v51  ;;  %2320 = vmatprep.subr.bf16.mxu0 %v2490_v5  ;;  %v2893_v51 = vpack.c.bf16 %v259_v47, %v256_v45 }
  0x35   : > { %531 = vmatmul.mubr.bf16.gmra.mxu0 %v2774_v53  ;;  %2305 = vmatmul.mubr.bf16.gmra.mxu1 %v2776_v54 }
  0x36   : > { %2097 = vmatpush3.bf16.msra.mxu1 %v2483_v57  ;;  %538 = vmatprep.mubr.bf16.mxu0 %v2783_v58  ;;  %v265_v57 = vld [vmem:[%s2705_s15 + $0x138] sm:$0xff] }
  0x37   : > { %2098 = vmatprep.subr.bf16.mxu1 %v2484_v61  ;;  %2308 = vmatprep.mubr.bf16.mxu1 %v2790_v62  ;;  %v2908_v61 = vpack.c.bf16 %v265_v57, %v262_v56 }
  0x38   : > { %2321 = vmatpush3.bf16.msra.mxu0 %v2490_v5  ;;  %v2504_v5 = vld [vmem:[%s3313_s3 + $0x30] sm:$0xff]  }
  0x39   : > { %2322 = vmatprep.subr.bf16.mxu0 %v2495_v22 }
  0x3a   : > { %2099 = vmatpush3.bf16.msra.mxu1 %v2486_v63  ;;  %v2910_v63 = vpack.c.bf16 %v272_v60, %v269_v59 }
  0x3b   : > { %2100 = vmatprep.subr.bf16.mxu1 %v2487_v4  ;;  %v2503_v4 = vld [vmem:[%s3313_s3 + $0x70] sm:$0xff]  }
  0x3c   : > { %2323 = vmatpush3.bf16.msra.mxu0 %v2495_v22  ;;  %v2514_v22 = vld [vmem:[%s3313_s3 + $0x8] sm:$0xff]  }
  0x3d   : > { %539 = vmatmul.mubr.bf16.gmra.mxu0 %v2809_v6  ;;  %2309 = vmatmul.mubr.bf16.gmra.mxu1 %v2811_v7 }
  0x3e   : > { %2101 = vmatpush3.bf16.msra.mxu1 %v2488_v11  ;;  %546 = vmatprep.mubr.bf16.mxu0 %v2819_v12  ;;  %v2508_v11 = vld [vmem:[%s3313_s3 + $0x20] sm:$0xff]  }
  0x3f   : > { %2102 = vmatprep.subr.bf16.mxu1 %v2489_v14  ;;  %2312 = vmatprep.mubr.bf16.mxu1 %v2825_v15  ;;  %v2517_v14 = vld [vmem:[%s3313_s3 + $0xb8] sm:$0xff]  }
  0x40   : > { %2324 = vmatprep.subr.bf16.mxu0 %v2497_v31 }
  0x41   : > { %2325 = vmatpush3.bf16.msra.mxu0 %v2497_v31  ;;  %v2521_v31 = vld [vmem:[%s3313_s3 + $0x98] sm:$0xff]  }
  0x42   : > { %2103 = vmatpush3.bf16.msra.mxu1 %v2491_v16  ;;  %2326 = vmatprep.subr.bf16.mxu0 %v2498_v34  ;;  %v2510_v16 = vld [vmem:[%s3313_s3 + $0x18] sm:$0xff]  }
  0x43   : > { %2104 = vmatprep.subr.bf16.mxu1 %v2492_v21  ;;  %v2519_v21 = vld [vmem:[%s3313_s3 + $0xa8] sm:$0xff]  }
  0x45   : > { %547 = vmatmul.mubr.bf16.gmra.mxu0 %v2845_v24  ;;  %2313 = vmatmul.mubr.bf16.gmra.mxu1 %v2847_v25 }
  0x46   : > { %2105 = vmatpush3.bf16.msra.mxu1 %v2493_v27  ;;  %554 = vmatprep.mubr.bf16.mxu0 %v2853_v30  ;;  %v2520_v27 = vld [vmem:[%s3313_s3 + $0xa0] sm:$0xff]  }
  0x47   : > { %2106 = vmatprep.subr.bf16.mxu1 %v2494_v32  ;;  %932 = vmatprep.mubr.bf16.mxu1 %v2719_v26  ;;  %v2524_v32 = vld [vmem:[%s3313_s3 + $0x80] sm:$0xff]  }
  0x48   : > { %2327 = vmatpush3.bf16.msra.mxu0 %v2498_v34 }
  0x49   : > { %2328 = vmatprep.subr.bf16.mxu0 %v2499_v43 }
  0x4a   : > { %2107 = vmatpush3.bf16.msra.mxu1 %v2496_v33 }
  0x4b   : > { %2348 = vmatprep.subr.bf16.mxu1 %v2517_v14 }
  0x4c   : > { %2329 = vmatpush3.bf16.msra.mxu0 %v2499_v43 }
  0x4d   : > { %555 = vmatmul.mubr.bf16.gmra.mxu0 %v2875_v41  ;;  %933 = vmatmul.mubr.bf16.vlgmr.msra.gmra.mxu1 %v2739_v36 }
  0x4e   : > { %562 = vmatprep.mubr.bf16.mxu0 %v2877_v42  ;;  %940 = vmatprep.mubr.bf16.mxu1 %v2753_v44 }
  0x4f   : > { %2330 = vmatprep.subr.bf16.mxu0 %v2500_v48  ;;  %2349 = vmatpush3.bf16.msra.mxu1 %v2517_v14 }
  0x50   : > { %2331 = vmatpush3.bf16.msra.mxu0 %v2500_v48  ;;  %2350 = vmatprep.subr.bf16.mxu1 %v2518_v18 }
  0x51   : > { %2172 = vmatprep.subr.bf16.mxu0 %v2501_v55 }
  0x53   : > { %2351 = vmatpush3.bf16.msra.mxu1 %v2518_v18 }
  0x54   : > { %2352 = vmatprep.subr.bf16.mxu1 %v2519_v21 }
  0x55   : > { %563 = vmatmul.mubr.bf16.gmra.mxu0 %v2893_v51  ;;  %941 = vmatmul.mubr.bf16.gmra.mxu1 %v2774_v53 }
  0x56   : > { %570 = vmatprep.mubr.bf16.mxu0 %v2895_v52  ;;  %948 = vmatprep.mubr.bf16.mxu1 %v2783_v58 }
  0x57   : > { %2353 = vmatpush3.bf16.msra.mxu1 %v2519_v21 }
  0x58   : > { %2354 = vmatprep.subr.bf16.mxu1 %v2520_v27 }
  0x5b   : > { %2355 = vmatpush3.bf16.msra.mxu1 %v2520_v27 }
  0x5c   : > { %2356 = vmatprep.subr.bf16.mxu1 %v2521_v31 }
  0x5d   : > { %571 = vmatmul.mubr.bf16.gmra.mxu0 %v2908_v61  ;;  %949 = vmatmul.mubr.bf16.gmra.mxu1 %v2809_v6 }
  0x5e   : > { %578 = vmatprep.mubr.bf16.mxu0 %v2910_v63  ;;  %956 = vmatprep.mubr.bf16.mxu1 %v2819_v12 }
  0x5f   : > { %2357 = vmatpush3.bf16.msra.mxu1 %v2521_v31 }
  0x65   : > { %579 = vmatmul.mubr.bf16.gmra.mxu0 %v2918_v2  ;;  %957 = vmatmul.mubr.bf16.gmra.mxu1 %v2845_v24 }
  0x66   : > { %964 = vmatprep.mubr.bf16.mxu1 %v2853_v30  ;;  %2332 = vmatprep.mubr.bf16.mxu0 %v2725_v29 }
  0x6d   : > { %965 = vmatmul.mubr.bf16.gmra.mxu1 %v2875_v41  ;;  %2333 = vmatmul.mubr.bf16.vlgmr.msra.gmra.mxu0 %v2741_v37 }
  0x6e   : > { %972 = vmatprep.mubr.bf16.mxu1 %v2877_v42  ;;  %2336 = vmatprep.mubr.bf16.mxu0 %v2758_v46 }
  0x6f   : > { %2173 = vmatpush3.bf16.msra.mxu0 %v2502_v3 }
  0x70   : > { %2174 = vmatprep.subr.bf16.mxu0 %v2503_v4 }
  0x73   : > { %2175 = vmatpush3.bf16.msra.mxu0 %v2504_v5 }
  0x74   : > { %2176 = vmatprep.subr.bf16.mxu0 %v2505_v8 }
  0x75   : > { %973 = vmatmul.mubr.bf16.gmra.mxu1 %v2893_v51  ;;  %2337 = vmatmul.mubr.bf16.gmra.mxu0 %v2776_v54 }
  0x76   : > { %980 = vmatprep.mubr.bf16.mxu1 %v2895_v52  ;;  %2340 = vmatprep.mubr.bf16.mxu0 %v2790_v62 }
  0x77   : > { %2177 = vmatpush3.bf16.msra.mxu0 %v2506_v9 }
  0x78   : > { %2178 = vmatprep.subr.bf16.mxu0 %v2507_v10 }
  0x7b   : > { %2179 = vmatpush3.bf16.msra.mxu0 %v2508_v11 }
  0x7c   : > { %2180 = vmatprep.subr.bf16.mxu0 %v2509_v13 }
  0x7d   : > { %981 = vmatmul.mubr.bf16.gmra.mxu1 %v2908_v61  ;;  %2341 = vmatmul.mubr.bf16.gmra.mxu0 %v2811_v7 }
  0x7e   : > { %988 = vmatprep.mubr.bf16.mxu1 %v2910_v63  ;;  %2344 = vmatprep.mubr.bf16.mxu0 %v2825_v15 }
  0x7f   : > { %2181 = vmatpush3.bf16.msra.mxu0 %v2510_v16 }
  0x80   : > { %2182 = vmatprep.subr.bf16.mxu0 %v2511_v17 }
  0x83   : > { %2183 = vmatpush3.bf16.msra.mxu0 %v2512_v19 }
  0x84   : > { %2184 = vmatprep.subr.bf16.mxu0 %v2513_v20 }
  0x85   : > { %989 = vmatmul.mubr.bf16.gmra.mxu1 %v2918_v2  ;;  %2345 = vmatmul.mubr.bf16.gmra.mxu0 %v2847_v25 }
  0x86   : > { %1326 = vmatprep.mubr.bf16.mxu0 %v2719_v26  ;;  %2364 = vmatprep.mubr.bf16.mxu1 %v2725_v29  ;;  %v2522_v26 = vld [vmem:[%s3313_s3 + $0x90] sm:$0xff]   ;;  %v2523_v29 = vld [vmem:[%s3313_s3 + $0x88] sm:$0xff]  }
  0x87   : > { %2185 = vmatpush3.bf16.msra.mxu0 %v2514_v22  ;;  %2358 = vmatprep.subr.bf16.mxu1 %v2522_v26 }
  0x88   : > { %2186 = vmatprep.subr.bf16.mxu0 %v2515_v23  ;;  %2359 = vmatpush3.bf16.msra.mxu1 %v2522_v26 }
  0x89   : > { %2360 = vmatprep.subr.bf16.mxu1 %v2523_v29 }
  0x8b   : > { %2187 = vmatpush3.bf16.msra.mxu0 %v2516_v28 }
  0x8c   : > { %2361 = vmatpush3.bf16.msra.mxu1 %v2523_v29 }
  0x8d   : > { %2362 = vmatprep.subr.bf16.mxu1 %v2524_v32 }
  0x8e   : > { %1327 = vmatmul.mubr.bf16.vlgmr.msra.gmra.mxu0 %v2739_v36 }
  0x8f   : > { %1334 = vmatprep.mubr.bf16.mxu0 %v2753_v44 }
  0x90   : > { %2363 = vmatpush3.bf16.msra.mxu1 %v2524_v32 }
  0x93   : > { %2365 = vmatmul.mubr.bf16.vlgmr.msra.gmra.mxu1 %v2741_v37 }
  0x94   : > { %2368 = vmatprep.mubr.bf16.mxu1 %v2758_v46 }
  0x96   : > { %1335 = vmatmul.mubr.bf16.gmra.mxu0 %v2774_v53 }
  0x97   : > { %1342 = vmatprep.mubr.bf16.mxu0 %v2783_v58 }
  0x9b   : > { %2369 = vmatmul.mubr.bf16.gmra.mxu1 %v2776_v54 }
  0x9c   : > { %2372 = vmatprep.mubr.bf16.mxu1 %v2790_v62 }
  0x9e   : > { %1343 = vmatmul.mubr.bf16.gmra.mxu0 %v2809_v6 }
  0x9f   : > { %1350 = vmatprep.mubr.bf16.mxu0 %v2819_v12 }
  0xa3   : > { %2373 = vmatmul.mubr.bf16.gmra.mxu1 %v2811_v7 }
  0xa4   : > { %2376 = vmatprep.mubr.bf16.mxu1 %v2825_v15 }
  0xa6   : > { %1351 = vmatmul.mubr.bf16.gmra.mxu0 %v2845_v24 }
  0xa7   : > { %1358 = vmatprep.mubr.bf16.mxu0 %v2853_v30 }
  0xab   : > { %2377 = vmatmul.mubr.bf16.gmra.mxu1 %v2847_v25 }
  0xae   : > { %1359 = vmatmul.mubr.bf16.gmra.mxu0 %v2875_v41 }
  0xaf   : > { %1366 = vmatprep.mubr.bf16.mxu0 %v2877_v42 }
  0xb6   : > { %1367 = vmatmul.mubr.bf16.gmra.mxu0 %v2893_v51 }
  0xb7   : > { %1374 = vmatprep.mubr.bf16.mxu0 %v2895_v52 }
  0xbe   : > { %1375 = vmatmul.mubr.bf16.gmra.mxu0 %v2908_v61 }
  0xbf   : > { %1382 = vmatprep.mubr.bf16.mxu0 %v2910_v63 }
  0xc6   : > { %1383 = vmatmul.mubr.bf16.gmra.mxu0 %v2918_v2 }
  0xed   : > { %v2028_v36 = vpop.f32.mrf.mxu0  ;;  %v2302_v37 = vpop.f32.mrf.mxu1 }
  0xef   : > { %v2029_v44 = vpop.f32.mrf.mxu0  ;;  %v621_v46 = vpop.f32.mrf.mxu1 }
  0xf0   : > { %v2030_v53 = vadd.f32 %v2029_v44, %v2028_v36 }
  0xf1   : > { %v2031_v54 = vpop.f32.mrf.mxu0  ;;  %v2303_v58 = vpop.f32.mrf.mxu1 }
  0xf2   : > { %v622_v7 = vadd.f32 %v2030_v53, %v621_v46 }
  0xf3   : > { %v2032_v62 = vpop.f32.mrf.mxu0  ;;  %v624_v6 = vpop.f32.mrf.mxu1 }
  0xf4   : > { %v2033_v12 = vadd.f32 %v2032_v62, %v2031_v54  ;;  %v684_v34 = vmul.f32 0.05103104, %v622_v7 }
  0xf5   : > { %v2034_v15 = vpop.f32.mrf.mxu0  ;;  %v2306_v24 = vpop.f32.mrf.mxu1 }
  0xf6   : > { %v625_v25 = vadd.f32 %v2033_v12, %v624_v6 }
  0xf7   : > { %v2035_v30 = vpop.f32.mrf.mxu0  ;;  %v637_v33 = vpop.f32.mrf.mxu1 }
  0xf8   : > { %v685_v35 = vmul.f32 0.05103104, %v625_v25  ;;  %v2036_v38 = vadd.f32 %v2035_v30, %v2034_v15 }
  0xf9   : > { %v2037_v39 = vpop.f32.mrf.mxu0  ;;  %v2307_v40 = vpop.f32.mrf.mxu1 }
  0xfa   : > { %v700_v41 = vpack.c.bf16 %v685_v35, %v684_v34  ;;  %v630_v42 = vadd.f32 %v2302_v37, %v2036_v38 }
  0xfb   : > { %v2038_v43 = vpop.f32.mrf.mxu0  ;;  %v640_v45 = vpop.f32.mrf.mxu1 }
  0xfc   : > { %v2039_v47 = vadd.f32 %v2038_v43, %v2037_v39  ;;  %2396 = vmatprep.mubr.bf16.mxu0 %v700_v41  ;;  %v3031_v55 = vmul.f32 0.05103104, %v630_v42 }
  0xfd   : > { %v2040_v48 = vpop.f32.mrf.mxu0  ;;  %v2310_v49 = vpop.f32.mrf.mxu1 }
  0xfe   : > { %v633_v50 = vadd.f32 %v2303_v58, %v2039_v47 }
  0xff   : > { %v2041_v51 = vpop.f32.mrf.mxu0  ;;  %v653_v52 = vpop.f32.mrf.mxu1 }
 0x100   : > { %v3033_v56 = vmul.f32 0.05103104, %v633_v50  ;;  %v2042_v57 = vadd.f32 %v2041_v51, %v2040_v48 }
 0x101   : > { %v2043_v59 = vpop.f32.mrf.mxu0  ;;  %v2311_v60 = vpop.f32.mrf.mxu1 }
 0x102   : > { %v638_v63 = vadd.f32 %v2042_v57, %v637_v33 }
 0x103   : > { %v2044_v0 = vpop.f32.mrf.mxu0  ;;  %v656_v1 = vpop.f32.mrf.mxu1 }
 0x104   : > { %v2045_v2 = vadd.f32 %v2044_v0, %v2043_v59  ;;  %v3039_v10 = vmul.f32 0.05103104, %v638_v63 }
 0x105   : > { %v2046_v3 = vpop.f32.mrf.mxu0  ;;  %v3037_v4 = vpop.f32.mrf.mxu1 }
 0x106   : > { %v641_v5 = vadd.f32 %v2045_v2, %v640_v45 }
 0x107   : > { %v2047_v8 = vpop.f32.mrf.mxu0  ;;  %v669_v9 = vpop.f32.mrf.mxu1 }
 0x108   : > { %v3041_v11 = vmul.f32 0.05103104, %v641_v5  ;;  %v2048_v13 = vadd.f32 %v2047_v8, %v2046_v3 }
 0x109   : > { %v2049_v14 = vpop.f32.mrf.mxu0  ;;  %v3043_v16 = vpop.f32.mrf.mxu1 }
 0x10a   : > { %v646_v17 = vadd.f32 %v2306_v24, %v2048_v13 }
 0x10b   : > { %v2050_v19 = vpop.f32.mrf.mxu0  ;;  %v672_v20 = vpop.f32.mrf.mxu1 }
 0x10c   : > { %v2051_v21 = vadd.f32 %v2050_v19, %v2049_v14  ;;  %v3047_v26 = vmul.f32 0.05103104, %v646_v17 }
 0x10d   : > { %v2052_v22 = vpop.f32.mrf.mxu0  ;;  %v2108_v23 = vpop.f32.mrf.mxu1 }
 0x10e   : > { %v649_v27 = vadd.f32 %v2307_v40, %v2051_v21 }
 0x10f   : > { %v2053_v28 = vpop.f32.mrf.mxu0  ;;  %v2109_v31 = vpop.f32.mrf.mxu1 }
 0x110   : > { %v3049_v29 = vmul.f32 0.05103104, %v649_v27  ;;  %v2054_v32 = vadd.f32 %v2053_v28, %v2052_v22  ;;  %v3051_v36 = vadd.f32 %v2109_v31, %v2108_v23 }
 0x111   : > { %v2055_v37 = vpop.f32.mrf.mxu0  ;;  %v2111_v44 = vpop.f32.mrf.mxu1 }
 0x112   : > { %v654_v46 = vadd.f32 %v2054_v32, %v653_v52 }
 0x113   : > { %v2056_v54 = vpop.f32.mrf.mxu0  ;;  %v2112_v58 = vpop.f32.mrf.mxu1 }
 0x114   : > { %v2057_v62 = vadd.f32 %v2056_v54, %v2055_v37  ;;  %v3055_v6 = vadd.f32 %v2112_v58, %v2111_v44  ;;  %v3057_v30 = vmul.f32 0.05103104, %v654_v46 }
 0x115   : > { %v2058_v7 = vpop.f32.mrf.mxu0  ;;  %v2114_v12 = vpop.f32.mrf.mxu1 }
 0x116   : > { %v657_v15 = vadd.f32 %v2057_v62, %v656_v1 }
 0x117   : > { %v2059_v24 = vpop.f32.mrf.mxu0  ;;  %v2115_v25 = vpop.f32.mrf.mxu1 }
 0x118   : > { %v3059_v33 = vmul.f32 0.05103104, %v657_v15  ;;  %v2060_v34 = vadd.f32 %v2059_v24, %v2058_v7  ;;  %v2116_v35 = vadd.f32 %v2115_v25, %v2114_v12 }
 0x119   : > { %v2061_v38 = vpop.f32.mrf.mxu0  ;;  %v2117_v39 = vpop.f32.mrf.mxu1 }
 0x11a   : > { %v662_v40 = vadd.f32 %v2310_v49, %v2060_v34 }
 0x11b   : > { %v2062_v42 = vpop.f32.mrf.mxu0  ;;  %v2118_v43 = vpop.f32.mrf.mxu1 }
 0x11c   : > { %v2063_v45 = vadd.f32 %v2062_v42, %v2061_v38  ;;  %v2119_v47 = vadd.f32 %v2118_v43, %v2117_v39  ;;  %v3063_v59 = vmul.f32 0.05103104, %v662_v40 }
 0x11d   : > { %v2064_v48 = vpop.f32.mrf.mxu0  ;;  %v2120_v50 = vpop.f32.mrf.mxu1 }
 0x11e   : > { %v665_v51 = vadd.f32 %v2311_v60, %v2063_v45 }
 0x11f   : > { %v2065_v52 = vpop.f32.mrf.mxu0  ;;  %v2121_v57 = vpop.f32.mrf.mxu1 }
 0x120   : > { %v3065_v63 = vmul.f32 0.05103104, %v665_v51  ;;  %v2066_v0 = vadd.f32 %v2065_v52, %v2064_v48  ;;  %v2122_v1 = vadd.f32 %v2121_v57, %v2120_v50 }
 0x121   : > { %v2067_v2 = vpop.f32.mrf.mxu0  ;;  %v2123_v49 = vpop.f32.mrf.mxu1 }
 0x122   : > { %v670_v3 = vadd.f32 %v2066_v0, %v669_v9 }
 0x123   : > { %v2068_v8 = vpop.f32.mrf.mxu0  ;;  %v2124_v13 = vpop.f32.mrf.mxu1 }
 0x124   : > { %v2069_v14 = vadd.f32 %v2068_v8, %v2067_v2  ;;  %v2125_v17 = vadd.f32 %v2124_v13, %v2123_v49  ;;  %v3073_v27 = vmul.f32 0.05103104, %v670_v3 }
 0x125   : > { %v2070_v19 = vpop.f32.mrf.mxu0  ;;  %v3069_v60 = vpop.f32.mrf.mxu1 }
 0x126   : > { %v673_v21 = vadd.f32 %v2069_v14, %v672_v20 }
 0x127   : > { %v2071_v22 = vpop.f32.mrf.mxu0  ;;  %v3071_v23 = vpop.f32.mrf.mxu1 }
 0x128   : > { %v3075_v28 = vmul.f32 0.05103104, %v673_v21  ;;  %v2072_v31 = vadd.f32 %v2071_v22, %v2070_v19 }
 0x129   : > { %v2073_v9 = vpop.f32.mrf.mxu0  ;;  %v3077_v32 = vpop.f32.mrf.mxu1 }
 0x12a   : > { %v678_v37 = vadd.f32 %v3037_v4, %v2072_v31 }
 0x12b   : > { %v2074_v46 = vpop.f32.mrf.mxu0  ;;  %v3082_v54 = vpop.f32.mrf.mxu1 }
 0x12c   : > { %v2075_v20 = vadd.f32 %v2074_v46, %v2073_v9  ;;  %v3089_v25 = vmul.f32 0.05103104, %v678_v37 }
 0x12d   : > { %v3084_v58 = vpop.f32.mrf.mxu1  ;;  %v2334_v62 = vpop.f32.mrf.mxu0 }
 0x12e   : > { %v681_v7 = vadd.f32 %v3043_v16, %v2075_v20  ;;  %v1040_v12 = vadd.f32 %v2334_v62, %v2116_v35  ;;  %3320 = vst [vmem:[#allocation2_spill] sm:$0xff] %v3089_v25 }
 0x12f   : > { %v3087_v15 = vpop.f32.mrf.mxu1  ;;  %v1031_v24 = vpop.f32.mrf.mxu0 }
 0x130   : > { %v3091_v34 = vmul.f32 0.05103104, %v681_v7  ;;  %v1032_v4 = vadd.f32 %v3051_v36, %v1031_v24 }
 0x131   : > { %v3094_v38 = vpop.f32.mrf.mxu1  ;;  %v2335_v39 = vpop.f32.mrf.mxu0 }
 0x132   : > { %3321 = vst [vmem:[#allocation3_spill] sm:$0xff] %v3091_v34  ;;  %v1043_v40 = vadd.f32 %v2335_v39, %v2119_v47 }
 0x133   : > { %v2136_v43 = vpop.f32.mrf.mxu1  ;;  %v1034_v45 = vpop.f32.mrf.mxu0 }
 0x134   : > { %v3098_v16 = vpack.c.bf16 %v1043_v40, %v1040_v12  ;;  %v1035_v35 = vadd.f32 %v3055_v6, %v1034_v45 }
 0x135   : > { %v2138_v48 = vpop.f32.mrf.mxu1  ;;  %v3101_v50 = vpop.f32.mrf.mxu0 }
 0x136   : > { %v3103_v51 = vpack.c.bf16 %v1035_v35, %v1032_v4 }
 0x137   : > { %v2139_v52 = vpop.f32.mrf.mxu1  ;;  %v1047_v36 = vpop.f32.mrf.mxu0 }
 0x138   : > { %v1048_v49 = vadd.f32 %v2122_v1, %v1047_v36  ;;  %v2140_v18 = vadd.f32 %v2139_v52, %v2138_v48 }
 0x139   : > { %v2141_v57 = vpop.f32.mrf.mxu1  ;;  %v3105_v0 = vpop.f32.mrf.mxu0 }
 0x13b   : > { %v2142_v47 = vpop.f32.mrf.mxu1  ;;  %v1050_v2 = vpop.f32.mrf.mxu0 }
 0x13c   : > { %v1051_v3 = vadd.f32 %v2125_v17, %v1050_v2  ;;  %v2143_v53 = vadd.f32 %v2142_v47, %v2141_v57  ;;  %v2134_v57 = vadd.f32 %v3087_v15, %v3084_v58  ;;  %v2131_v58 = vadd.f32 %v3082_v54, %v3077_v32 }
 0x13d   : > { %v2144_v8 = vpop.f32.mrf.mxu1  ;;  %v2342_v13 = vpop.f32.mrf.mxu0 }
 0x13e   : > { %v3107_v14 = vpack.c.bf16 %v1051_v3, %v1048_v49 }
 0x13f   : > { %v2145_v19 = vpop.f32.mrf.mxu1  ;;  %v1063_v6 = vpop.f32.mrf.mxu0 }
 0x140   : > { %v2146_v40 = vadd.f32 %v2145_v19, %v2144_v8  ;;  %v1072_v8 = vadd.f32 %v2342_v13, %v2140_v18  ;;  %v1064_v52 = vadd.f32 %v2134_v57, %v1063_v6 }
 0x141   : > { %v2147_v21 = vpop.f32.mrf.mxu1  ;;  %v2343_v22 = vpop.f32.mrf.mxu0 }
 0x143   : > { %v2148_v31 = vpop.f32.mrf.mxu1  ;;  %v1066_v9 = vpop.f32.mrf.mxu0 }
 0x144   : > { %v2149_v17 = vadd.f32 %v2148_v31, %v2147_v21  ;;  %v1075_v21 = vadd.f32 %v2343_v22, %v2143_v53 }
 0x145   : > { %v2150_v37 = vpop.f32.mrf.mxu1  ;;  %v2346_v46 = vpop.f32.mrf.mxu0 }
 0x147   : > { %v2151_v20 = vpop.f32.mrf.mxu1  ;;  %v1079_v62 = vpop.f32.mrf.mxu0 }
 0x148   : > { %v2152_v24 = vadd.f32 %v2151_v20, %v2150_v37  ;;  %v1080_v49 = vadd.f32 %v2146_v40, %v1079_v62 }
 0x149   : > { %v2153_v7 = vpop.f32.mrf.mxu1  ;;  %v2347_v12 = vpop.f32.mrf.mxu0 }
 0x14a   : > { %v1088_v45 = vadd.f32 %v2346_v46, %v2152_v24 }
 0x14b   : > { %v2154_v4 = vpop.f32.mrf.mxu1  ;;  %v1082_v1 = vpop.f32.mrf.mxu0 }
 0x14c   : > { %v2155_v39 = vadd.f32 %v2154_v4, %v2153_v7  ;;  %v1083_v36 = vadd.f32 %v2149_v17, %v1082_v1  ;;  %v1099_v7 = vpack.c.bf16 %v1075_v21, %v1072_v8 }
 0x14e   : > { %v1091_v35 = vadd.f32 %v2347_v12, %v2155_v39  ;;  %v2188_v2 = vpop.f32.mrf.mxu0  ;;  %v1100_v5 = vpack.c.bf16 %v1083_v36, %v1080_v49 }
 0x150   : > { %v1101_v3 = vpack.c.bf16 %v1091_v35, %v1088_v45  ;;  %v2189_v42 = vpop.f32.mrf.mxu0  ;;  %v1059_v45 = vadd.f32 %v3105_v0, %v2131_v58 }
 0x151   : > { %v2190_v44 = vadd.f32 %v2189_v42, %v2188_v2  ;;  %v2137_v42 = vadd.f32 %v2136_v43, %v3094_v38 }
 0x152   : > { %2380 = vmatprep.subr.bf16.mxu0 %v1101_v3  ;;  %v2191_v41 = vpop.f32.mrf.mxu0 }
 0x153   : > { %2381 = vmatpush3.bf16.xpose.msra.mxu0 %v1101_v3  ;;  %v2366_v62 = vpop.f32.mrf.mxu1 }
 0x154   : > { %2382 = vmatprep.subr.bf16.mxu0 %v1100_v5  ;;  %v2192_v37 = vpop.f32.mrf.mxu0 }
 0x155   : > { %v2193_v20 = vadd.f32 %v2192_v37, %v2191_v41  ;;  %v1425_v1 = vpop.f32.mrf.mxu1  ;;  %v1067_v41 = vadd.f32 %v2137_v42, %v1066_v9  ;;  %v2128_v9 = vadd.f32 %v3071_v23, %v3069_v60 }
 0x156   : > { %v2194_v31 = vpop.f32.mrf.mxu0  ;;  %v1426_v13 = vadd.f32 %v2190_v44, %v1425_v1 }
 0x157   : > { %v2367_v18 = vpop.f32.mrf.mxu1  ;;  %v1098_v17 = vpack.c.bf16 %v1067_v41, %v1064_v52  ;;  %v1056_v36 = vadd.f32 %v3101_v50, %v2128_v9 }
 0x158   : > { %v2195_v19 = vpop.f32.mrf.mxu0 }
 0x159   : > { %v2196_v46 = vadd.f32 %v2195_v19, %v2194_v31  ;;  %v1428_v22 = vpop.f32.mrf.mxu1  ;;  %v1097_v3 = vpack.c.bf16 %v1059_v45, %v1056_v36 }
 0x15a   : > { %v2197_v12 = vpop.f32.mrf.mxu0  ;;  %v1429_v39 = vadd.f32 %v2193_v20, %v1428_v22 }
 0x15b   : > { %2383 = vmatpush3.bf16.xpose.msra.mxu0 %v1100_v5  ;;  %v1434_v53 = vadd.f32 %v2366_v62, %v2196_v46  ;;  %v3120_v40 = vpop.f32.mrf.mxu1 }
 0x15c   : > { %2384 = vmatprep.subr.bf16.mxu0 %v1099_v7  ;;  %v2198_v24 = vpop.f32.mrf.mxu0  ;;  %v3126_v6 = vpack.c.bf16 %v1429_v39, %v1426_v13 }
 0x15d   : > { %v2199_v4 = vadd.f32 %v2198_v24, %v2197_v12  ;;  %v3128_v44 = vpop.f32.mrf.mxu1 }
 0x15e   : > { %v3112_v48 = vpop.f32.mrf.mxu0  ;;  %3323 = vst [vmem:[#allocation5_spill] sm:$0xff] %v3126_v6 }
 0x15f   : > { %v1437_v5 = vadd.f32 %v2367_v18, %v2199_v4  ;;  %v3134_v49 = vpop.f32.mrf.mxu1 }
 0x160   : > { %v3114_v47 = vpop.f32.mrf.mxu0 }
 0x161   : > { %v3118_v43 = vpack.c.bf16 %v1437_v5, %v1434_v53  ;;  %v3136_v37 = vpop.f32.mrf.mxu1 }
 0x162   : > { %v3116_v38 = vpop.f32.mrf.mxu0 }
 0x163   : > { %3322 = vst [vmem:[#allocation4_spill] sm:$0xff] %v3118_v43  ;;  %2385 = vmatpush3.bf16.xpose.msra.mxu0 %v1099_v7  ;;  %v2374_v31 = vpop.f32.mrf.mxu1 }
 0x164   : > { %2386 = vmatprep.subr.bf16.mxu0 %v1098_v17  ;;  %v3124_v15 = vpop.f32.mrf.mxu0 }
 0x165   : > { %v1457_v23 = vpop.f32.mrf.mxu1 }
 0x166   : > { %v2206_v35 = vpop.f32.mrf.mxu0 }
 0x167   : > { %v2375_v19 = vpop.f32.mrf.mxu1 }
 0x168   : > { %v2207_v2 = vpop.f32.mrf.mxu0 }
 0x169   : > { %v1460_v12 = vpop.f32.mrf.mxu1 }
 0x16a   : > { %v2209_v32 = vpop.f32.mrf.mxu0 }
 0x16b   : > { %2387 = vmatpush3.bf16.xpose.msra.mxu0 %v1098_v17  ;;  %v2378_v24 = vpop.f32.mrf.mxu1 }
 0x16c   : > { %2388 = vmatprep.subr.bf16.mxu0 %v1097_v3  ;;  %v2210_v54 = vpop.f32.mrf.mxu0 }
 0x16d   : > { %v1473_v57 = vpop.f32.mrf.mxu1 }
 0x16e   : > { %v2212_v20 = vpop.f32.mrf.mxu0 }
 0x16f   : > { %v2379_v18 = vpop.f32.mrf.mxu1 }
 0x170   : > { %v2213_v21 = vpop.f32.mrf.mxu0 }
 0x171   : > { %v1476_v22 = vpop.f32.mrf.mxu1  ;;  %v2214_v61 = vadd.f32 %v2213_v21, %v2212_v20  ;;  %v2202_v21 = vadd.f32 %v3114_v47, %v3112_v48 }
 0x172   : > { %v2215_v8 = vpop.f32.mrf.mxu0 }
 0x173   : > { %2389 = vmatpush3.bf16.xpose.msra.mxu0 %v1097_v3 }
 0x174   : > { %2390 = vmatprep.subr.bf16.mxu0 %v3107_v14  ;;  %v2216_v60 = vpop.f32.mrf.mxu0 }
 0x175   : > { %v2217_v6 = vadd.f32 %v2216_v60, %v2215_v8  ;;  %v1500_v8 = vld [vmem:[%s3314_s4 + $0x20] sm:$0xff] }
 0x176   : > { %v2218_v50 = vpop.f32.mrf.mxu0 }
 0x177   : > { %v1461_v20 = vadd.f32 %v2217_v6, %v1460_v12 }
 0x178   : > { %v2219_v0 = vpop.f32.mrf.mxu0 }
 0x179   : > { %v2220_v17 = vadd.f32 %v2219_v0, %v2218_v50  ;;  %v2208_v50 = vadd.f32 %v2207_v2, %v2206_v35  ;;  %v2211_v0 = vadd.f32 %v2210_v54, %v2209_v32 }
 0x17a   : > { %v2221_v46 = vpop.f32.mrf.mxu0 }
 0x17b   : > { %2391 = vmatpush3.bf16.xpose.msra.mxu0 %v3107_v14  ;;  %v1466_v25 = vadd.f32 %v2374_v31, %v2220_v17  ;;  %v1505_v17 = vld [vmem:[%s3314_s4 + $0x48] sm:$0xff] }
 0x17c   : > { %2392 = vmatprep.subr.bf16.mxu0 %v3098_v16  ;;  %v2222_v7 = vpop.f32.mrf.mxu0 }
 0x17d   : > { %v2223_v39 = vadd.f32 %v2222_v7, %v2221_v46  ;;  %v1458_v46 = vadd.f32 %v2214_v61, %v1457_v23  ;;  %v3327_v61 = vpack.c.bf16 %v3059_v33, %v3057_v30  ;;  %v3331_v30 = vld [vmem:[#allocation3_spill] sm:$0xff]  ;;  %v3332_v33 = vld [vmem:[#allocation2_spill] sm:$0xff] }
 0x17e   : > { %v2224_v62 = vpop.f32.mrf.mxu0 }
 0x17f   : > { %v1469_v34 = vadd.f32 %v2375_v19, %v2223_v39  ;;  %v1502_v19 = vld [vmem:[%s3314_s4 + $0x30] sm:$0xff] }
 0x180   : > { %v2225_v42 = vpop.f32.mrf.mxu0 }
 0x181   : > { %v2226_v52 = vadd.f32 %v2225_v42, %v2224_v62  ;;  %v3324_v42 = vpack.c.bf16 %v3033_v56, %v3031_v55  ;;  %v1493_v7 = vpack.c.bf16 %v1469_v34, %v1466_v25  ;;  %v2205_v55 = vadd.f32 %v3124_v15, %v3116_v38  ;;  %v3334_v15 = vld [vmem:[#allocation5_spill] sm:$0xff] }
 0x182   : > { %v2227_v4 = vpop.f32.mrf.mxu0  ;;  %v1450_v56 = vadd.f32 %v3120_v40, %v2208_v50  ;;  %v1442_v25 = vadd.f32 %v2202_v21, %v3128_v44  ;;  %v3328_v38 = vpack.c.bf16 %v3065_v63, %v3063_v59  ;;  %v3333_v40 = vpack.c.bf16 %v3331_v30, %v3332_v33  ;;  %v1498_v59 = vld [vmem:[%s3314_s4 + $0x10] sm:$0xff]  ;;  %v1499_v44 = vld [vmem:[%s3314_s4 + $0x18] sm:$0xff] }
 0x183   : > { %2393 = vmatpush3.bf16.xpose.msra.mxu0 %v3098_v16  ;;  %v1474_v16 = vadd.f32 %v2226_v52, %v1473_v57  ;;  %v1445_v48 = vadd.f32 %v2205_v55, %v3136_v37  ;;  %v1511_v21 = vld [vmem:[%s3314_s4 + $0x78] sm:$0xff] }
 0x184   : > { %2394 = vmatprep.subr.bf16.mxu0 %v3103_v51  ;;  %v2228_v1 = vpop.f32.mrf.mxu0 }
 0x185   : > { %v2229_v13 = vadd.f32 %v2228_v1, %v2227_v4  ;;  %v1490_v47 = vpack.c.bf16 %v1445_v48, %v1442_v25 }
 0x186   : > { %v2230_v41 = vpop.f32.mrf.mxu0 }
 0x187   : > { %v1477_v36 = vadd.f32 %v2229_v13, %v1476_v22 }
 0x188   : > { %v2231_v53 = vpop.f32.mrf.mxu0 }
 0x189   : > { %v2232_v14 = vadd.f32 %v2231_v53, %v2230_v41  ;;  %v1494_v62 = vpack.c.bf16 %v1477_v36, %v1474_v16  ;;  %v1503_v41 = vld [vmem:[%s3314_s4 + $0x38] sm:$0xff]  ;;  %v1508_v36 = vld [vmem:[%s3314_s4 + $0x60] sm:$0xff] }
 0x18a   : > { %v2233_v5 = vpop.f32.mrf.mxu0 }
 0x18b   : > { %2395 = vmatpush3.bf16.xpose.msra.mxu0 %v3103_v51  ;;  %v1482_v9 = vadd.f32 %v2378_v24, %v2232_v14  ;;  %v3325_v51 = vpack.c.bf16 %v3041_v11, %v3039_v10  ;;  %v1453_v10 = vadd.f32 %v3134_v49, %v2211_v0  ;;  %v1492_v11 = vpack.c.bf16 %v1461_v20, %v1458_v46  ;;  %v1497_v49 = vld [vmem:[%s3314_s4 + $0x8] sm:$0xff] }
 0x18c   : > { %v2234_v58 = vpop.f32.mrf.mxu0  ;;  %v1501_v24 = vld [vmem:[%s3314_s4 + $0x28] sm:$0xff] }
 0x18d   : > { %v2235_v45 = vadd.f32 %v2234_v58, %v2233_v5  ;;  %v1491_v34 = vpack.c.bf16 %v1453_v10, %v1450_v56  ;;  %v1506_v5 = vld [vmem:[%s3314_s4 + $0x50] sm:$0xff]  ;;  %v1509_v0 = vld [vmem:[%s3314_s4 + $0x68] sm:$0xff] }
 0x18f   : > { %v1485_v3 = vadd.f32 %v2379_v18, %v2235_v45  ;;  %v1504_v18 = vld [vmem:[%s3314_s4 + $0x40] sm:$0xff]  ;;  %v1507_v45 = vld [vmem:[%s3314_s4 + $0x58] sm:$0xff] }
 0x191   : > { %v1495_v43 = vpack.c.bf16 %v1485_v3, %v1482_v9 }
 0x192   : > { %2397 = vmatmul.mubr.bf16.vlgmr.msra.gmra.mxu0 %v3324_v42 }
 0x193   : > { %2400 = vmatprep.mubr.bf16.mxu0 %v3325_v51  ;;  %2412 = vmatprep.subr.bf16.mxu1 %v1495_v43  ;;  %v1510_v51 = vld [vmem:[%s3314_s4 + $0x70] sm:$0xff] }
 0x194   : > { %2413 = vmatpush3.bf16.msra.mxu1 %v1495_v43  ;;  %v3326_v43 = vpack.c.bf16 %v3049_v29, %v3047_v26  ;;  %v3329_v26 = vpack.c.bf16 %v3075_v28, %v3073_v27  ;;  %v3330_v29 = vld [vmem:[#allocation4_spill] sm:$0xff]  ;;  %v1496_v27 = vld [vmem:[%s3314_s4] sm:$0xff] }
 0x195   : > { %2414 = vmatprep.subr.bf16.mxu1 %v1494_v62 }
 0x198   : > { %2415 = vmatpush3.bf16.msra.mxu1 %v1494_v62 }
 0x199   : > { %2416 = vmatprep.subr.bf16.mxu1 %v1493_v7 }
 0x19a   : > { %2401 = vmatmul.mubr.bf16.gmra.mxu0 %v3326_v43 }
 0x19b   : > { %2404 = vmatprep.mubr.bf16.mxu0 %v3327_v61 }
 0x19c   : > { %2417 = vmatpush3.bf16.msra.mxu1 %v1493_v7 }
 0x19d   : > { %2418 = vmatprep.subr.bf16.mxu1 %v1492_v11 }
 0x1a0   : > { %2419 = vmatpush3.bf16.msra.mxu1 %v1492_v11 }
 0x1a1   : > { %2420 = vmatprep.subr.bf16.mxu1 %v1491_v34 }
 0x1a2   : > { %2405 = vmatmul.mubr.bf16.gmra.mxu0 %v3328_v38 }
 0x1a3   : > { %2408 = vmatprep.mubr.bf16.mxu0 %v3329_v26 }
 0x1a4   : > { %2421 = vmatpush3.bf16.msra.mxu1 %v1491_v34 }
 0x1a5   : > { %2422 = vmatprep.subr.bf16.mxu1 %v1490_v47 }
 0x1a8   : > { %2423 = vmatpush3.bf16.msra.mxu1 %v1490_v47 }
 0x1a9   : > { %2424 = vmatprep.subr.bf16.mxu1 %v3330_v29 }
 0x1aa   : > { %2409 = vmatmul.mubr.bf16.gmra.mxu0 %v3333_v40 }
 0x1ac   : > { %2425 = vmatpush3.bf16.msra.mxu1 %v3330_v29 }
 0x1ad   : > { %2426 = vmatprep.subr.bf16.mxu1 %v3334_v15 }
 0x1b0   : > { %2427 = vmatpush3.bf16.msra.mxu1 %v3334_v15 }
 0x252   : > { %v2398_v63 = vpop.f32.mrf.mxu0 }
 0x253   : > { %v3183_v28 = vadd.f32 %v2398_v63, %v1498_v59 }
 0x254   : > { %v1546_v6 = vpop.f32.mrf.mxu0 }
 0x255   : > { %v3188_v35 = vadd.f32 %v1546_v6, %v1496_v27  ;;  %1613 = vmax.xlane.f32.xlu1 %v3183_v28 }
 0x256   : > { %v2399_v2 = vpop.f32.mrf.mxu0 }
 0x257   : > { %v3194_v32 = vadd.f32 %v2399_v2, %v1499_v44  ;;  %1609 = vmax.xlane.f32.xlu0 %v3188_v35 }
 0x258   : > { %v1549_v54 = vpop.f32.mrf.mxu0 }
 0x259   : > { %v3197_v37 = vadd.f32 %v1549_v54, %v1497_v49  ;;  %1615 = vmax.xlane.f32.xlu1 %v3194_v32 }
 0x25a   : > { %v2402_v31 = vpop.f32.mrf.mxu0 }
 0x25b   : > { %1611 = vmax.xlane.f32.xlu0 %v3197_v37  ;;  %v3213_v1 = vadd.f32 %v2402_v31, %v1502_v19 }
 0x25c   : > { %v1562_v60 = vpop.f32.mrf.mxu0 }
 0x25d   : > { %v3204_v23 = vadd.f32 %v1562_v60, %v1500_v8 }
 0x25e   : > { %v2403_v12 = vpop.f32.mrf.mxu0 }
 0x25f   : > { %1617 = vmax.xlane.f32.xlu0 %v3204_v23  ;;  %v3222_v13 = vadd.f32 %v2403_v12, %v1503_v41 }
 0x260   : > { %v1565_v4 = vpop.f32.mrf.mxu0 }
 0x261   : > { %v1566_v57 = vadd.f32 %v1565_v4, %v1501_v24 }
 0x262   : > { %v2406_v53 = vpop.f32.mrf.mxu0 }
 0x263   : > { %1619 = vmax.xlane.f32.xlu1 %v1566_v57  ;;  %1621 = vmax.xlane.f32.xlu0 %v3213_v1  ;;  %v3234_v58 = vadd.f32 %v2406_v53, %v1506_v5 }
 0x264   : > { %v1578_v52 = vpop.f32.mrf.mxu0 }
 0x265   : > { %v3224_v14 = vadd.f32 %v1578_v52, %v1504_v18 }
 0x266   : > { %v2407_v22 = vpop.f32.mrf.mxu0 }
 0x267   : > { %1623 = vmax.xlane.f32.xlu1 %v3222_v13  ;;  %1625 = vmax.xlane.f32.xlu0 %v3224_v14  ;;  %v3246_v62 = vadd.f32 %v2407_v22, %v1507_v45 }
 0x268   : > { %v1581_v39 = vpop.f32.mrf.mxu0 }
 0x269   : > { %v3236_v9 = vadd.f32 %v1581_v39, %v1505_v17 }
 0x26a   : > { %v2410_v16 = vpop.f32.mrf.mxu0 }
 0x26b   : > { %1627 = vmax.xlane.f32.xlu1 %v3236_v9  ;;  %1629 = vmax.xlane.f32.xlu0 %v3234_v58  ;;  %v3258_v7 = vadd.f32 %v2410_v16, %v1510_v51 }
 0x26c   : > { %v1594_v3 = vpop.f32.mrf.mxu0 }
 0x26d   : > { %v3248_v42 = vadd.f32 %v1594_v3, %v1508_v36 }
 0x26e   : > { %v2411_v50 = vpop.f32.mrf.mxu0 }
 0x26f   : > { %1631 = vmax.xlane.f32.xlu1 %v3246_v62  ;;  %1633 = vmax.xlane.f32.xlu0 %v3248_v42  ;;  %v3267_v55 = vadd.f32 %v2411_v50, %v1511_v21 }
 0x270   : > { %v1597_v46 = vpop.f32.mrf.mxu0 }
 0x271   : > { %v3260_v20 = vadd.f32 %v1597_v46, %v1509_v0 }
 0x273   : > { %1635 = vmax.xlane.f32.xlu1 %v3260_v20  ;;  %1637 = vmax.xlane.f32.xlu0 %v3258_v7 }
 0x277   : > { %1639 = vmax.xlane.f32.xlu1 %v3267_v55 }
 0x2de   : > { %v1614_v56 = vpop.xlane.xlu1 %1613 }
 0x2df   : > { %v1643_v10 = vsub.f32 %v3183_v28, %v1614_v56 }
 0x2e0   : > { %v1610_v11 = vpop.xlane.xlu0 %1609 }
 0x2e1   : > { %v1661_v43 = vmul.f32 1.442695, %v1643_v10  ;;  %v1641_v61 = vsub.f32 %v3188_v35, %v1610_v11 }
 0x2e2   : > { %v1616_v25 = vpop.xlane.xlu1 %1615 }
 0x2e3   : > { %2525 = vpow2.f32 %v1661_v43  ;;  %v1657_v34 = vmul.f32 1.442695, %v1641_v61  ;;  %v1644_v48 = vsub.f32 %v3194_v32, %v1616_v25 }
 0x2e4   : > { %v1612_v47 = vpop.xlane.xlu0 %1611 }
 0x2e5   : > { %v1663_v38 = vmul.f32 1.442695, %v1644_v48  ;;  %v1642_v26 = vsub.f32 %v3197_v37, %v1612_v47  ;;  %2527 = vpow2.f32 %v1657_v34 }
 0x2e7   : > { %2529 = vpow2.f32 %v1663_v38  ;;  %v1659_v29 = vmul.f32 1.442695, %v1642_v26 }
 0x2e8   : > { %v1618_v30 = vpop.xlane.xlu0 %1617 }
 0x2e9   : > { %2531 = vpow2.f32 %v1659_v29  ;;  %v1645_v33 = vsub.f32 %v3204_v23, %v1618_v30 }
 0x2eb   : > { %v1665_v40 = vmul.f32 1.442695, %v1645_v33 }
 0x2ec   : > { %v1620_v15 = vpop.xlane.xlu1 %1619  ;;  %v1622_v59 = vpop.xlane.xlu0 %1621 }
 0x2ed   : > { %v1646_v63 = vsub.f32 %v1566_v57, %v1620_v15  ;;  %v1647_v27 = vsub.f32 %v3213_v1, %v1622_v59  ;;  %2533 = vpow2.f32 %v1665_v40 }
 0x2ef   : > { %v1667_v28 = vmul.f32 1.442695, %v1646_v63  ;;  %v1669_v6 = vmul.f32 1.442695, %v1647_v27 }
 0x2f0   : > { %v2526_v44 = vpop.eup %2525  ;;  %v1624_v35 = vpop.xlane.xlu1 %1623 }
 0x2f1   : > { %v1626_v2 = vpop.xlane.xlu0 %1625  ;;  %2535 = vpow2.f32 %v1667_v28  ;;  %v1648_v49 = vsub.f32 %v3222_v13, %v1624_v35  ;;  %1693 = vadd.xlane.f32.xlu0 %v2526_v44 }
 0x2f2   : > { %v1649_v32 = vsub.f32 %v3224_v14, %v1626_v2  ;;  %2537 = vpow2.f32 %v1669_v6  ;;  %v2528_v54 = vpop.eup %2527 }
 0x2f3   : > { %v1671_v37 = vmul.f32 1.442695, %v1648_v49 }
 0x2f4   : > { %v2530_v31 = vpop.eup %2529  ;;  %v1673_v8 = vmul.f32 1.442695, %v1649_v32  ;;  %v1628_v60 = vpop.xlane.xlu1 %1627 }
 0x2f5   : > { %v1630_v23 = vpop.xlane.xlu0 %1629  ;;  %2539 = vpow2.f32 %v1671_v37  ;;  %v1650_v19 = vsub.f32 %v3236_v9, %v1628_v60  ;;  %1695 = vadd.xlane.f32.xlu1 %v2530_v31  ;;  %1689 = vadd.xlane.f32.xlu0 %v2528_v54  ;;  %v1722_v18 = vpack.c.bf16 %v2530_v31, %v2526_v44 }
 0x2f6   : > { %v1651_v12 = vsub.f32 %v3234_v58, %v1630_v23  ;;  %v2532_v24 = vpop.eup %2531  ;;  %2541 = vpow2.f32 %v1673_v8 }
 0x2f7   : > { %v1675_v4 = vmul.f32 1.442695, %v1650_v19  ;;  %v1721_v57 = vpack.c.bf16 %v2532_v24, %v2528_v54 }
 0x2f8   : > { %v1677_v1 = vmul.f32 1.442695, %v1651_v12  ;;  %v1632_v41 = vpop.xlane.xlu1 %1631 }
 0x2f9   : > { %v1634_v53 = vpop.xlane.xlu0 %1633  ;;  %2543 = vpow2.f32 %v1675_v4  ;;  %v1652_v52 = vsub.f32 %v3246_v62, %v1632_v41  ;;  %1691 = vadd.xlane.f32.xlu1 %v2532_v24  ;;  %2428 = vmatprep.mubr.bf16.mxu1 %v1721_v57 }
 0x2fa   : > { %v1653_v13 = vsub.f32 %v3248_v42, %v1634_v53  ;;  %2545 = vpow2.f32 %v1677_v1  ;;  %2429 = vmatmul.mubr.bf16.vlgmr.msra.gmra.mxu1 %v1722_v18  ;;  %v2534_v39 = vpop.eup %2533 }
 0x2fb   : > { %v1679_v14 = vmul.f32 1.442695, %v1652_v52 }
 0x2fc   : > { %v1681_v5 = vmul.f32 1.442695, %v1653_v13  ;;  %v1636_v22 = vpop.xlane.xlu1 %1635 }
 0x2fd   : > { %v1638_v17 = vpop.xlane.xlu0 %1637  ;;  %2547 = vpow2.f32 %v1679_v14  ;;  %v1654_v58 = vsub.f32 %v3260_v20, %v1636_v22 }
 0x2fe   : > { %v1655_v9 = vsub.f32 %v3258_v7, %v1638_v17  ;;  %v2536_v45 = vpop.eup %2535  ;;  %2549 = vpow2.f32 %v1681_v5 }
 0x2ff   : > { %v2538_v16 = vpop.eup %2537  ;;  %v1683_v36 = vmul.f32 1.442695, %v1654_v58  ;;  %v1723_v3 = vpack.c.bf16 %v2536_v45, %v2534_v39 }
 0x300   : > { %v1685_v62 = vmul.f32 1.442695, %v1655_v9  ;;  %1701 = vadd.xlane.f32.xlu0 %v2538_v16  ;;  %v1640_v42 = vpop.xlane.xlu1 %1639 }
 0x301   : > { %2551 = vpow2.f32 %v1683_v36  ;;  %v1656_v51 = vsub.f32 %v3267_v55, %v1640_v42  ;;  %2432 = vmatprep.mubr.bf16.mxu1 %v1723_v3 }
 0x302   : > { %v2540_v50 = vpop.eup %2539  ;;  %2553 = vpow2.f32 %v1685_v62 }
 0x303   : > { %v1687_v0 = vmul.f32 1.442695, %v1656_v51  ;;  %1703 = vadd.xlane.f32.xlu1 %v2540_v50  ;;  %v1724_v46 = vpack.c.bf16 %v2540_v50, %v2538_v16  ;;  %v2542_v20 = vpop.eup %2541 }
 0x304   : > { %1697 = vadd.xlane.f32.xlu0 %v2534_v39 }
 0x305   : > { %2555 = vpow2.f32 %v1687_v0  ;;  %2433 = vmatmul.mubr.bf16.gmra.mxu1 %v1724_v46 }
 0x306   : > { %v2544_v7 = vpop.eup %2543 }
 0x307   : > { %v2546_v21 = vpop.eup %2545  ;;  %1699 = vadd.xlane.f32.xlu1 %v2536_v45  ;;  %v1725_v56 = vpack.c.bf16 %v2544_v7, %v2542_v20 }
 0x308   : > { %1709 = vadd.xlane.f32.xlu0 %v2546_v21 }
 0x309   : > { %2436 = vmatprep.mubr.bf16.mxu1 %v1725_v56 }
 0x30a   : > { %v2548_v10 = vpop.eup %2547 }
 0x30b   : > { %1711 = vadd.xlane.f32.xlu1 %v2548_v10  ;;  %v1726_v11 = vpack.c.bf16 %v2548_v10, %v2546_v21  ;;  %v2550_v55 = vpop.eup %2549 }
 0x30c   : > { %1705 = vadd.xlane.f32.xlu0 %v2542_v20 }
 0x30d   : > { %2437 = vmatmul.mubr.bf16.gmra.mxu1 %v1726_v11 }
 0x30e   : > { %v2552_v43 = vpop.eup %2551 }
 0x30f   : > { %1707 = vadd.xlane.f32.xlu1 %v2544_v7  ;;  %v1727_v61 = vpack.c.bf16 %v2552_v43, %v2550_v55  ;;  %v2554_v25 = vpop.eup %2553 }
 0x310   : > { %1713 = vadd.xlane.f32.xlu0 %v2550_v55 }
 0x311   : > { %2440 = vmatprep.mubr.bf16.mxu1 %v1727_v61 }
 0x312   : > { %v2556_v34 = vpop.eup %2555 }
 0x313   : > { %1715 = vadd.xlane.f32.xlu1 %v2552_v43  ;;  %v1728_v48 = vpack.c.bf16 %v2556_v34, %v2554_v25 }
 0x314   : > { %1717 = vadd.xlane.f32.xlu0 %v2554_v25 }
 0x315   : > { %2441 = vmatmul.mubr.bf16.gmra.mxu1 %v1728_v48 }
 0x317   : > { %1719 = vadd.xlane.f32.xlu1 %v2556_v34 }
 0x37a   : > { %v1694_v47 = vpop.xlane.xlu0 %1693 }
 0x37b   : > { %2557 = vrcp.f32 %v1694_v47 }
 0x37e   : > { %v1696_v38 = vpop.xlane.xlu1 %1695  ;;  %v1690_v26 = vpop.xlane.xlu0 %1689 }
 0x37f   : > { %2559 = vrcp.f32 %v1690_v26 }
 0x380   : > { %2561 = vrcp.f32 %v1696_v38 }
 0x382   : > { %v1692_v29 = vpop.xlane.xlu1 %1691 }
 0x383   : > { %2563 = vrcp.f32 %v1692_v29 }
 0x388   : > { %v2558_v28 = vpop.eup %2557 }
 0x389   : > { %v1702_v30 = vpop.xlane.xlu0 %1701 }
 0x38a   : > { %2565 = vrcp.f32 %v1702_v30 }
 0x38c   : > { %v1704_v33 = vpop.xlane.xlu1 %1703  ;;  %v2560_v35 = vpop.eup %2559 }
 0x38d   : > { %v1698_v40 = vpop.xlane.xlu0 %1697  ;;  %v2562_v54 = vpop.eup %2561 }
 0x38e   : > { %2567 = vrcp.f32 %v1698_v40 }
 0x38f   : > { %2569 = vrcp.f32 %v1704_v33 }
 0x390   : > { %v1700_v15 = vpop.xlane.xlu1 %1699  ;;  %v2564_v60 = vpop.eup %2563 }
 0x391   : > { %v1710_v59 = vpop.xlane.xlu0 %1709  ;;  %2571 = vrcp.f32 %v1700_v15 }
 0x392   : > { %2573 = vrcp.f32 %v1710_v59 }
 0x394   : > { %v1712_v63 = vpop.xlane.xlu1 %1711 }
 0x395   : > { %v1706_v27 = vpop.xlane.xlu0 %1705 }
 0x396   : > { %2575 = vrcp.f32 %v1706_v27 }
 0x397   : > { %2577 = vrcp.f32 %v1712_v63  ;;  %v2566_v24 = vpop.eup %2565 }
 0x398   : > { %v1708_v49 = vpop.xlane.xlu1 %1707 }
 0x399   : > { %v1714_v31 = vpop.xlane.xlu0 %1713  ;;  %2579 = vrcp.f32 %v1708_v49 }
 0x39b   : > { %v2568_v41 = vpop.eup %2567 }
 0x39c   : > { %v1716_v12 = vpop.xlane.xlu1 %1715  ;;  %v2570_v52 = vpop.eup %2569 }
 0x39d   : > { %v1718_v4 = vpop.xlane.xlu0 %1717 }
 0x39e   : > { %2581 = vrcp.f32 %v1718_v4  ;;  %v2572_v22 = vpop.eup %2571 }
 0x39f   : > { %2583 = vrcp.f32 %v1714_v31  ;;  %v2574_v58 = vpop.eup %2573 }
 0x3a0   : > { %v1720_v13 = vpop.xlane.xlu1 %1719 }
 0x3a1   : > { %2585 = vrcp.f32 %v1720_v13 }
 0x3a2   : > { %2587 = vrcp.f32 %v1716_v12 }
 0x3a3   : > { %v2576_v16 = vpop.eup %2575 }
 0x3a4   : > { %v2578_v62 = vpop.eup %2577 }
 0x3a6   : > { %v2580_v50 = vpop.eup %2579 }
 0x3ab   : > { %v2582_v20 = vpop.eup %2581 }
 0x3ac   : > { %v2584_v56 = vpop.eup %2583 }
 0x3ae   : > { %v2586_v55 = vpop.eup %2585 }
 0x3af   : > { %v2588_v25 = vpop.eup %2587 }
 0x3ba   : > { %v2430_v6 = vpop.f32.mrf.mxu1 }
 0x3bb   : > { %v1844_v44 = vmul.f32 %v2558_v28, %v2430_v6 }
 0x3bc   : > { %v1763_v2 = vpop.f32.mrf.mxu1 }
 0x3bd   : > { %1860 = vst [vmem:[%s3289_s21 + $0x10] sm:$0xff] %v1844_v44  ;;  %v1842_v32 = vmul.f32 %v2560_v35, %v1763_v2 }
 0x3be   : > { %v2431_v37 = vpop.f32.mrf.mxu1 }
 0x3bf   : > { %1858 = vst [vmem:[%s3289_s21] sm:$0xff] %v1842_v32  ;;  %v1845_v8 = vmul.f32 %v2562_v54, %v2431_v37 }
 0x3c0   : > { %v1766_v23 = vpop.f32.mrf.mxu1 }
 0x3c1   : > { %1861 = vst [vmem:[%s3289_s21 + $0x18] sm:$0xff] %v1845_v8  ;;  %v1843_v19 = vmul.f32 %v2564_v60, %v1766_v23 }
 0x3c3   : > { %1859 = vst [vmem:[%s3289_s21 + $0x8] sm:$0xff] %v1843_v19 }
 0x3c5   : > { %v2434_v1 = vpop.f32.mrf.mxu1 }
 0x3c6   : > { %v1848_v57 = vmul.f32 %v2566_v24, %v2434_v1 }
 0x3c7   : > { %v1779_v53 = vpop.f32.mrf.mxu1 }
 0x3c8   : > { %1864 = vst [vmem:[%s3289_s21 + $0x30] sm:$0xff] %v1848_v57  ;;  %v1846_v18 = vmul.f32 %v2568_v41, %v1779_v53 }
 0x3c9   : > { %v2435_v14 = vpop.f32.mrf.mxu1 }
 0x3ca   : > { %1862 = vst [vmem:[%s3289_s21 + $0x20] sm:$0xff] %v1846_v18  ;;  %v1849_v5 = vmul.f32 %v2570_v52, %v2435_v14 }
 0x3cb   : > { %v1782_v17 = vpop.f32.mrf.mxu1 }
 0x3cc   : > { %1865 = vst [vmem:[%s3289_s21 + $0x38] sm:$0xff] %v1849_v5  ;;  %v1847_v39 = vmul.f32 %v2572_v22, %v1782_v17 }
 0x3cd   : > { %v2438_v9 = vpop.f32.mrf.mxu1 }
 0x3ce   : > { %1863 = vst [vmem:[%s3289_s21 + $0x28] sm:$0xff] %v1847_v39  ;;  %v1852_v45 = vmul.f32 %v2574_v58, %v2438_v9 }
 0x3cf   : > { %v1795_v36 = vpop.f32.mrf.mxu1 }
 0x3d0   : > { %1868 = vst [vmem:[%s3289_s21 + $0x50] sm:$0xff] %v1852_v45  ;;  %v1850_v3 = vmul.f32 %v2576_v16, %v1795_v36 }
 0x3d1   : > { %v2439_v42 = vpop.f32.mrf.mxu1 }
 0x3d2   : > { %1866 = vst [vmem:[%s3289_s21 + $0x40] sm:$0xff] %v1850_v3  ;;  %v1853_v51 = vmul.f32 %v2578_v62, %v2439_v42 }
 0x3d3   : > { %v1798_v0 = vpop.f32.mrf.mxu1 }
 0x3d4   : > { %1869 = vst [vmem:[%s3289_s21 + $0x58] sm:$0xff] %v1853_v51  ;;  %v1851_v46 = vmul.f32 %v2580_v50, %v1798_v0 }
 0x3d5   : > { %v2442_v7 = vpop.f32.mrf.mxu1 }
 0x3d6   : > { %1867 = vst [vmem:[%s3289_s21 + $0x48] sm:$0xff] %v1851_v46  ;;  %v1856_v21 = vmul.f32 %v2582_v20, %v2442_v7 }
 0x3d7   : > { %v1811_v10 = vpop.f32.mrf.mxu1 }
 0x3d8   : > { %1872 = vst [vmem:[%s3289_s21 + $0x70] sm:$0xff] %v1856_v21  ;;  %v1854_v11 = vmul.f32 %v2584_v56, %v1811_v10 }
 0x3d9   : > { %v2443_v43 = vpop.f32.mrf.mxu1 }
 0x3da   : > { %1870 = vst [vmem:[%s3289_s21 + $0x60] sm:$0xff] %v1854_v11  ;;  %v1857_v61 = vmul.f32 %v2586_v55, %v2443_v43 }
 0x3db   : > { %v1814_v34 = vpop.f32.mrf.mxu1 }
 0x3dc   : > { %1873 = vst [vmem:[%s3289_s21 + $0x78] sm:$0xff] %v1857_v61  ;;  %v1855_v48 = vmul.f32 %v2588_v25, %v1814_v34 }
 0x3de   : > { %1871 = vst [vmem:[%s3289_s21 + $0x68] sm:$0xff] %v1855_v48 }
 0x3df PF: > { %s15_s18 = sadd.s32 1, %s2595_s18  }
 0x3e0   : > { %p12_p4 = scmp.ge.s32.totalorder %s15_s18, 4  }
 0x3e2   :  { %14 = sbr.rel (!%p12_p4) target bundleno = 1 (0x1), region = 70 }

</bundles_post_ra>
